<compile_context>
chip_gen: v7x
topology: tpu7x:2x2x1
jax: 0.10.0
libtpu: 0.0.40
codegen_flags: <defaults>
</compile_context>

<pallas_src>
import functools

import jax
import jax.numpy as jnp
from jax.experimental import pallas as pl
from jax.experimental.pallas import tpu as pltpu


VMEM_LIMIT_BYTES = 32 * 1024 * 1024   # explicit scoped-VMEM budget (safe on v5e/v6e/v7x)


# ---------------------------------------------------------------------------
# In-kernel helpers
# ---------------------------------------------------------------------------
def _layernorm(x, alpha, bias):
    """Custom Norm: alpha * (x - mean) / (std_ddof1 + 1e-6) + bias (f32 math)."""
    mean = jnp.mean(x, axis=-1, keepdims=True)
    # torch.Tensor.std default is the unbiased estimator (ddof = 1)
    var = jnp.sum((x - mean) ** 2, axis=-1, keepdims=True) / (x.shape[-1] - 1)
    inv = pl.reciprocal(jnp.sqrt(var) + 1e-6, approx=True)   # EUP, off the VPU path
    return alpha * (x - mean) * inv + bias


# ---------------------------------------------------------------------------
# Kernels
# ---------------------------------------------------------------------------
def attn_block_kernel(xq_ref, kv_ref, mask_ref, alpha_ref, beta_ref,
                      wq_ref, bq_ref, wk_ref, bk_ref, wv_ref, bv_ref,
                      wo_ref, bo_ref, o_ref, *, heads, normalize_kv):
    """Fused LN -> multi-head attention -> output proj -> residual add.

    Blocks: xq (1, tq, D) pre-norm residual/query rows, kv (1, Sk, D),
    mask (1, tq, Sk); weights bf16, biases/LN params f32; Wo head-split (H, dk, D).
    """
    xq = xq_ref[0]                                           # (tq, D) f32
    kv = kv_ref[0]                                           # (Sk, D) f32
    mask = mask_ref[0]                                       # (tq, Sk) f32
    d = xq.shape[-1]
    dk = d // heads
    scale = dk ** -0.5

    # LN fused in-kernel (q always normalized; kv only for self-attention).
    yq = _layernorm(xq, alpha_ref[...], beta_ref[...]).astype(jnp.bfloat16)
    if normalize_kv:
        ykv = _layernorm(kv, alpha_ref[...], beta_ref[...]).astype(jnp.bfloat16)
    else:
        ykv = kv.astype(jnp.bfloat16)

    # Full-width projections (bf16 inputs, f32 accumulation on the MXU).
    q = jnp.dot(yq, wq_ref[...], preferred_element_type=jnp.float32) + bq_ref[...]
    k = jnp.dot(ykv, wk_ref[...], preferred_element_type=jnp.float32) + bk_ref[...]
    v = jnp.dot(ykv, wv_ref[...], preferred_element_type=jnp.float32) + bv_ref[...]

    def split_heads(t):                                      # (S, D) -> (H, S, dk) bf16
        return jnp.stack(
            [t[:, h * dk:(h + 1) * dk] for h in range(heads)], axis=0
        ).astype(jnp.bfloat16)

    qh, kh, vh = split_heads(q), split_heads(k), split_heads(v)

    # Head-batched score / context matmuls (single batched dot each).
    scores = jnp.einsum("hqc,hkc->hqk", qh, kh,
                        preferred_element_type=jnp.float32) * scale   # (H, tq, Sk)
    scores = jnp.where(mask[None, :, :] == 0, -1e9, scores)           # masked_fill(mask==0)
    scores = scores - jnp.max(scores, axis=-1, keepdims=True)
    p = jnp.exp(scores)
    p = p * pl.reciprocal(jnp.sum(p, axis=-1, keepdims=True), approx=True)

    ctx = jnp.einsum("hqk,hkc->hqc", p.astype(jnp.bfloat16), vh,
                     preferred_element_type=jnp.float32)              # (H, tq, dk)

    # Output projection without materializing the (tq, D) head concat:
    # out = sum_h ctx_h @ Wo[h*dk:(h+1)*dk, :]   with Wo stored as (H, dk, D).
    out = jnp.sum(
        jnp.einsum("hqc,hcd->hqd", ctx.astype(jnp.bfloat16), wo_ref[...],
                   preferred_element_type=jnp.float32),
        axis=0) + bo_ref[...]                                          # (tq, D) f32

    o_ref[0] = xq + out                                                # residual add


def ffn_block_kernel(x_ref, alpha_ref, beta_ref, w1_ref, b1_ref, w2_ref, b2_ref,
                     o_ref, y_scr, acc_scr):
    """Fused LN -> Linear(D,Dff) -> ReLU -> Linear(Dff,D) -> residual add.

    Grid axis 2 reduces over Dff tiles; acc_scr (tS, D) f32 accumulates the
    second matmul; y_scr holds the bf16 normalized activations for reuse.
    """
    k = pl.program_id(2)

    @pl.when(k == 0)
    def _init():
        y = _layernorm(x_ref[0], alpha_ref[...], beta_ref[...])
        y_scr[...] = y.astype(jnp.bfloat16)
        acc_scr[...] = jnp.zeros_like(acc_scr)

    h = jnp.dot(y_scr[...], w1_ref[...],
                preferred_element_type=jnp.float32) + b1_ref[...]      # (tS, tDff)
    h = jnp.maximum(h, 0.0)                                            # ReLU
    acc_scr[...] += jnp.dot(h.astype(jnp.bfloat16), w2_ref[...],
                            preferred_element_type=jnp.float32)

    @pl.when(k == pl.num_programs(2) - 1)
    def _finalize():
        o_ref[0] = x_ref[0] + acc_scr[...] + b2_ref[...]               # residual add


# ---------------------------------------------------------------------------
# Tile selection
# ---------------------------------------------------------------------------
def _seq_tile(s, cap=128):
    if s <= cap:
        return s
    for t in range(cap, 7, -8):
        if s % t == 0:
            return t
    return s


def _dff_tile(dff, cap=1024):
    if dff <= cap:
        return dff
    for t in range(cap, 127, -128):
        if dff % t == 0:
            return t
    return dff


# ---------------------------------------------------------------------------
# Wrappers (pallas_call plumbing)
# ---------------------------------------------------------------------------
def attention_block(x, kv, mask, ln_params, attn_params, heads, normalize_kv):
    """x + MHA(LN(x), kv', kv', mask) where kv' = LN(kv) iff normalize_kv."""
    B, Sq, D = x.shape
    Sk = kv.shape[1]
    assert D % heads == 0
    dk = D // heads
    alpha, beta = ln_params
    wq, bq, wk, bk, wv, bv, wo, bo = attn_params
    wo_h = wo.reshape(heads, dk, D)                  # head-split output projection

    tq = _seq_tile(Sq)
    grid = (B, Sq // tq)
    kernel = functools.partial(attn_block_kernel, heads=heads,
                               normalize_kv=normalize_kv)

    # NOTE: weights use a constant index_map; single-buffering them
    # (pipeline_mode=pl.Buffered(1)) would free more VMEM on v7x.
    w_spec = pl.BlockSpec((D, D), lambda b, i: (0, 0))
    b_spec = pl.BlockSpec((1, D), lambda b, i: (0, 0))

    return pl.pallas_call(
        kernel,
        out_shape=jax.ShapeDtypeStruct((B, Sq, D), jnp.float32),
        grid=grid,
        in_specs=[
            pl.BlockSpec((1, tq, D), lambda b, i: (b, i, 0)),    # x (residual + LN->q)
            pl.BlockSpec((1, Sk, D), lambda b, i: (b, 0, 0)),    # k/v source
            pl.BlockSpec((1, tq, Sk), lambda b, i: (b, i, 0)),   # mask
            b_spec, b_spec,                                      # LN alpha, bias
            w_spec, b_spec,                                      # Wq, bq
            w_spec, b_spec,                                      # Wk, bk
            w_spec, b_spec,                                      # Wv, bv
            pl.BlockSpec((heads, dk, D), lambda b, i: (0, 0, 0)),  # Wo (head-split)
            b_spec,                                              # bo
        ],
        out_specs=pl.BlockSpec((1, tq, D), lambda b, i: (b, i, 0)),
        compiler_params=pltpu.CompilerParams(
            dimension_semantics=("parallel", "parallel"),
            vmem_limit_bytes=VMEM_LIMIT_BYTES),
    )(x, kv, mask, alpha, beta, wq, bq, wk, bk, wv, bv, wo_h, bo)


def ffn_block(x, ln_params, ffn_params):
    """x + FFN(LN(x)) with the hidden (Dff) dimension tiled as a grid reduction."""
    B, S, D = x.shape
    alpha, beta = ln_params
    w1, b1, w2, b2 = ffn_params
    Dff = w1.shape[1]

    ts = _seq_tile(S)
    tdff = _dff_tile(Dff)
    grid = (B, S // ts, Dff // tdff)

    return pl.pallas_call(
        ffn_block_kernel,
        out_shape=jax.ShapeDtypeStruct((B, S, D), jnp.float32),
        grid=grid,
        in_specs=[
            pl.BlockSpec((1, ts, D), lambda b, i, k: (b, i, 0)),   # x (residual + LN)
            pl.BlockSpec((1, D), lambda b, i, k: (0, 0)),          # LN alpha
            pl.BlockSpec((1, D), lambda b, i, k: (0, 0)),          # LN bias
            pl.BlockSpec((D, tdff), lambda b, i, k: (0, k)),       # W1 tile
            pl.BlockSpec((1, tdff), lambda b, i, k: (0, k)),       # b1 tile
            pl.BlockSpec((tdff, D), lambda b, i, k: (k, 0)),       # W2 tile
            pl.BlockSpec((1, D), lambda b, i, k: (0, 0)),          # b2
        ],
        out_specs=pl.BlockSpec((1, ts, D), lambda b, i, k: (b, i, 0)),
        scratch_shapes=[
            pltpu.VMEM((ts, D), jnp.bfloat16),   # normalized activations (reused per k)
            pltpu.VMEM((ts, D), jnp.float32),    # f32 accumulator for the 2nd matmul
        ],
        compiler_params=pltpu.CompilerParams(
            dimension_semantics=("parallel", "parallel", "arbitrary"),
            vmem_limit_bytes=VMEM_LIMIT_BYTES),
    )(x, alpha, beta, w1, b1, w2, b2)


def decoder_layer(x, e_outputs, src_mask, tgt_mask, params, heads):
    # x = x + SelfAttn(LN1(x)) — LN + residual fused into the attention kernel.
    x = attention_block(x, x, tgt_mask,
                        (params["ln1_alpha"], params["ln1_bias"]),
                        params["attn1"], heads, normalize_kv=True)
    # x = x + CrossAttn(LN2(x), enc, enc) — only q is normalized (matches reference).
    x = attention_block(x, e_outputs, src_mask,
                        (params["ln2_alpha"], params["ln2_bias"]),
                        params["attn2"], heads, normalize_kv=False)
    # x = x + FFN(LN3(x))
    x = ffn_block(x, (params["ln3_alpha"], params["ln3_bias"]), params["ffn"])
    return x


# ---------------------------------------------------------------------------
# Deterministic parameter construction (weights stored in bf16, rest in f32)
# ---------------------------------------------------------------------------
def init_params(key, dimension, d_ff):
    keys = jax.random.split(key, 4)

    def lin(k, din, dout, scale=0.05):
        kw, kb = jax.random.split(k)
        w = (scale * jax.random.normal(kw, (din, dout), jnp.float32)).astype(jnp.bfloat16)
        b = scale * jax.random.normal(kb, (1, dout), jnp.float32)
        return w, b

    def attn(k):
        ks = jax.random.split(k, 4)
        wq, bq = lin(ks[0], dimension, dimension)
        wk, bk = lin(ks[1], dimension, dimension)
        wv, bv = lin(ks[2], dimension, dimension)
        wo, bo = lin(ks[3], dimension, dimension)
        return (wq, bq, wk, bk, wv, bv, wo, bo)

    w1, b1 = lin(keys[0], dimension, d_ff)
    w2, b2 = lin(keys[1], d_ff, dimension)
    return {
        "ln1_alpha": jnp.ones((1, dimension), jnp.float32),
        "ln1_bias": jnp.zeros((1, dimension), jnp.float32),
        "ln2_alpha": jnp.ones((1, dimension), jnp.float32),
        "ln2_bias": jnp.zeros((1, dimension), jnp.float32),
        "ln3_alpha": jnp.ones((1, dimension), jnp.float32),
        "ln3_bias": jnp.zeros((1, dimension), jnp.float32),
        "attn1": attn(keys[2]),
        "attn2": attn(keys[3]),
        "ffn": (w1, b1, w2, b2),
    }


# ---------------------------------------------------------------------------
if __name__ == "__main__":
    B, S_TGT, S_SRC = 2, 8, 16
    DIM, HEADS, D_FF = 32, 4, 64

    root = jax.random.PRNGKey(0)
    k_x, k_e, k_p = jax.random.split(root, 3)

    x = jax.random.normal(k_x, (B, S_TGT, DIM), jnp.float32)
    e_outputs = jax.random.normal(k_e, (B, S_SRC, DIM), jnp.float32)

    # causal target mask (1 = attend, 0 = masked), full source mask
    tgt_mask = jnp.tril(jnp.ones((S_TGT, S_TGT), jnp.float32))
    tgt_mask = jnp.broadcast_to(tgt_mask, (B, S_TGT, S_TGT))
    src_mask = jnp.ones((B, S_TGT, S_SRC), jnp.float32)

    params = init_params(k_p, DIM, D_FF)

    out = decoder_layer(x, e_outputs, src_mask, tgt_mask, params, HEADS)
    jax.block_until_ready(out)
    assert out.shape == (B, S_TGT, DIM) and out.dtype == jnp.float32
    assert bool(jnp.all(jnp.isfinite(out)))
    print("KERNEL_OK")
</pallas_src>

<mosaic_0001>
module attributes {stable_mosaic.version = 11 : i64} {
  func.func @attn_block_kernel(%arg0: i32, %arg1: i32, %arg2: memref<1x8x32xf32, #tpu.memory_space<vmem>>, %arg3: memref<1x8x32xf32, #tpu.memory_space<vmem>>, %arg4: memref<1x8x8xf32, #tpu.memory_space<vmem>>, %arg5: memref<1x32xf32, #tpu.memory_space<vmem>>, %arg6: memref<1x32xf32, #tpu.memory_space<vmem>>, %arg7: memref<32x32xbf16, #tpu.memory_space<vmem>>, %arg8: memref<1x32xf32, #tpu.memory_space<vmem>>, %arg9: memref<32x32xbf16, #tpu.memory_space<vmem>>, %arg10: memref<1x32xf32, #tpu.memory_space<vmem>>, %arg11: memref<32x32xbf16, #tpu.memory_space<vmem>>, %arg12: memref<1x32xf32, #tpu.memory_space<vmem>>, %arg13: memref<4x8x32xbf16, #tpu.memory_space<vmem>>, %arg14: memref<1x32xf32, #tpu.memory_space<vmem>>, %arg15: memref<1x8x32xf32, #tpu.memory_space<vmem>>) attributes {dimension_semantics = [#tpu.dimension_semantics<parallel>, #tpu.dimension_semantics<parallel>], iteration_bounds = array<i64: 2, 1>, scalar_prefetch = 0 : i64, scratch_operands = 0 : i64, tpu.core_type = #tpu.core_type<tc>, window_params = [{transform_indices = @transform_0, window_bounds = array<i64: 1, 8, 32>}, {transform_indices = @transform_1, window_bounds = array<i64: 1, 8, 32>}, {transform_indices = @transform_2, window_bounds = array<i64: 1, 8, 8>}, {pipeline_mode = #tpu.pipeline_mode<synchronous>, transform_indices = @transform_3, window_bounds = array<i64: 1, 32>}, {pipeline_mode = #tpu.pipeline_mode<synchronous>, transform_indices = @transform_4, window_bounds = array<i64: 1, 32>}, {pipeline_mode = #tpu.pipeline_mode<synchronous>, transform_indices = @transform_5, window_bounds = array<i64: 32, 32>}, {pipeline_mode = #tpu.pipeline_mode<synchronous>, transform_indices = @transform_6, window_bounds = array<i64: 1, 32>}, {pipeline_mode = #tpu.pipeline_mode<synchronous>, transform_indices = @transform_7, window_bounds = array<i64: 32, 32>}, {pipeline_mode = #tpu.pipeline_mode<synchronous>, transform_indices = @transform_8, window_bounds = array<i64: 1, 32>}, {pipeline_mode = #tpu.pipeline_mode<synchronous>, transform_indices = @transform_9, window_bounds = array<i64: 32, 32>}, {pipeline_mode = #tpu.pipeline_mode<synchronous>, transform_indices = @transform_10, window_bounds = array<i64: 1, 32>}, {pipeline_mode = #tpu.pipeline_mode<synchronous>, transform_indices = @transform_11, window_bounds = array<i64: 4, 8, 32>}, {pipeline_mode = #tpu.pipeline_mode<synchronous>, transform_indices = @transform_12, window_bounds = array<i64: 1, 32>}, {transform_indices = @transform_13, window_bounds = array<i64: 1, 8, 32>}]} {
    %c0 = arith.constant 0 : index
    %c0_0 = arith.constant 0 : index
    %c0_1 = arith.constant 0 : index
    %0 = vector.load %arg2[%c0, %c0_0, %c0_1] : memref<1x8x32xf32, #tpu.memory_space<vmem>>, vector<1x8x32xf32>
    %1 = vector.shape_cast %0 : vector<1x8x32xf32> to vector<8x32xf32>
    %c0_2 = arith.constant 0 : index
    %c0_3 = arith.constant 0 : index
    %c0_4 = arith.constant 0 : index
    %2 = vector.load %arg3[%c0_2, %c0_3, %c0_4] : memref<1x8x32xf32, #tpu.memory_space<vmem>>, vector<1x8x32xf32>
    %3 = vector.shape_cast %2 : vector<1x8x32xf32> to vector<8x32xf32>
    %c0_5 = arith.constant 0 : index
    %c0_6 = arith.constant 0 : index
    %c0_7 = arith.constant 0 : index
    %4 = vector.load %arg4[%c0_5, %c0_6, %c0_7] : memref<1x8x8xf32, #tpu.memory_space<vmem>>, vector<1x8x8xf32>
    %5 = vector.shape_cast %4 : vector<1x8x8xf32> to vector<8x8xf32>
    %c0_8 = arith.constant 0 : index
    %c0_9 = arith.constant 0 : index
    %6 = vector.load %arg5[%c0_8, %c0_9] : memref<1x32xf32, #tpu.memory_space<vmem>>, vector<1x32xf32>
    %c0_10 = arith.constant 0 : index
    %c0_11 = arith.constant 0 : index
    %7 = vector.load %arg6[%c0_10, %c0_11] : memref<1x32xf32, #tpu.memory_space<vmem>>, vector<1x32xf32>
    %cst = arith.constant dense<0.000000e+00> : vector<8xf32>
    %8 = vector.multi_reduction <add>, %1, %cst [1] : vector<8x32xf32> to vector<8xf32>
    %9 = vector.shape_cast %8 : vector<8xf32> to vector<8x1xf32>
    %cst_12 = arith.constant 3.200000e+01 : f32
    %10 = vector.broadcast %cst_12 : f32 to vector<8x1xf32>
    %11 = arith.divf %9, %10 : vector<8x1xf32>
    %12 = vector.broadcast %11 : vector<8x1xf32> to vector<8x32xf32>
    %13 = arith.subf %1, %12 : vector<8x32xf32>
    %14 = arith.mulf %13, %13 : vector<8x32xf32>
    %cst_13 = arith.constant dense<0.000000e+00> : vector<8xf32>
    %15 = vector.multi_reduction <add>, %14, %cst_13 [1] : vector<8x32xf32> to vector<8xf32>
    %16 = vector.shape_cast %15 : vector<8xf32> to vector<8x1xf32>
    %cst_14 = arith.constant 3.100000e+01 : f32
    %17 = vector.broadcast %cst_14 : f32 to vector<8x1xf32>
    %18 = arith.divf %16, %17 : vector<8x1xf32>
    %19 = math.sqrt %18 : vector<8x1xf32>
    %cst_15 = arith.constant 9.99999997E-7 : f32
    %20 = vector.broadcast %cst_15 : f32 to vector<8x1xf32>
    %21 = arith.addf %19, %20 : vector<8x1xf32>
    %22 = tpu.reciprocal %21 {approx = true} : vector<8x1xf32> -> vector<8x1xf32>
    %23 = vector.broadcast %11 : vector<8x1xf32> to vector<8x32xf32>
    %24 = arith.subf %1, %23 : vector<8x32xf32>
    %25 = vector.broadcast %6 : vector<1x32xf32> to vector<8x32xf32>
    %26 = arith.mulf %25, %24 : vector<8x32xf32>
    %27 = vector.broadcast %22 : vector<8x1xf32> to vector<8x32xf32>
    %28 = arith.mulf %26, %27 : vector<8x32xf32>
    %29 = vector.broadcast %7 : vector<1x32xf32> to vector<8x32xf32>
    %30 = arith.addf %28, %29 : vector<8x32xf32>
    %31 = arith.truncf %30 : vector<8x32xf32> to vector<8x32xbf16>
    %c0_16 = arith.constant 0 : index
    %c0_17 = arith.constant 0 : index
    %32 = vector.load %arg5[%c0_16, %c0_17] : memref<1x32xf32, #tpu.memory_space<vmem>>, vector<1x32xf32>
    %c0_18 = arith.constant 0 : index
    %c0_19 = arith.constant 0 : index
    %33 = vector.load %arg6[%c0_18, %c0_19] : memref<1x32xf32, #tpu.memory_space<vmem>>, vector<1x32xf32>
    %cst_20 = arith.constant dense<0.000000e+00> : vector<8xf32>
    %34 = vector.multi_reduction <add>, %3, %cst_20 [1] : vector<8x32xf32> to vector<8xf32>
    %35 = vector.shape_cast %34 : vector<8xf32> to vector<8x1xf32>
    %cst_21 = arith.constant 3.200000e+01 : f32
    %36 = vector.broadcast %cst_21 : f32 to vector<8x1xf32>
    %37 = arith.divf %35, %36 : vector<8x1xf32>
    %38 = vector.broadcast %37 : vector<8x1xf32> to vector<8x32xf32>
    %39 = arith.subf %3, %38 : vector<8x32xf32>
    %40 = arith.mulf %39, %39 : vector<8x32xf32>
    %cst_22 = arith.constant dense<0.000000e+00> : vector<8xf32>
    %41 = vector.multi_reduction <add>, %40, %cst_22 [1] : vector<8x32xf32> to vector<8xf32>
    %42 = vector.shape_cast %41 : vector<8xf32> to vector<8x1xf32>
    %cst_23 = arith.constant 3.100000e+01 : f32
    %43 = vector.broadcast %cst_23 : f32 to vector<8x1xf32>
    %44 = arith.divf %42, %43 : vector<8x1xf32>
    %45 = math.sqrt %44 : vector<8x1xf32>
    %cst_24 = arith.constant 9.99999997E-7 : f32
    %46 = vector.broadcast %cst_24 : f32 to vector<8x1xf32>
    %47 = arith.addf %45, %46 : vector<8x1xf32>
    %48 = tpu.reciprocal %47 {approx = true} : vector<8x1xf32> -> vector<8x1xf32>
    %49 = vector.broadcast %37 : vector<8x1xf32> to vector<8x32xf32>
    %50 = arith.subf %3, %49 : vector<8x32xf32>
    %51 = vector.broadcast %32 : vector<1x32xf32> to vector<8x32xf32>
    %52 = arith.mulf %51, %50 : vector<8x32xf32>
    %53 = vector.broadcast %48 : vector<8x1xf32> to vector<8x32xf32>
    %54 = arith.mulf %52, %53 : vector<8x32xf32>
    %55 = vector.broadcast %33 : vector<1x32xf32> to vector<8x32xf32>
    %56 = arith.addf %54, %55 : vector<8x32xf32>
    %57 = arith.truncf %56 : vector<8x32xf32> to vector<8x32xbf16>
    %c0_25 = arith.constant 0 : index
    %c0_26 = arith.constant 0 : index
    %58 = vector.load %arg7[%c0_25, %c0_26] : memref<32x32xbf16, #tpu.memory_space<vmem>>, vector<32x32xbf16>
    %cst_27 = arith.constant dense<0.000000e+00> : vector<8x32xf32>
    %59 = tpu.matmul %31, %58, %cst_27 {dimension_numbers = #tpu.dot_dimension_numbers<[1], [0], [0], [1], [0, 0, 1, 1], [], []>} : vector<8x32xbf16>, vector<32x32xbf16>, vector<8x32xf32> -> vector<8x32xf32>
    %c0_28 = arith.constant 0 : index
    %c0_29 = arith.constant 0 : index
    %60 = vector.load %arg8[%c0_28, %c0_29] : memref<1x32xf32, #tpu.memory_space<vmem>>, vector<1x32xf32>
    %61 = vector.broadcast %60 : vector<1x32xf32> to vector<8x32xf32>
    %62 = arith.addf %59, %61 : vector<8x32xf32>
    %c0_30 = arith.constant 0 : index
    %c0_31 = arith.constant 0 : index
    %63 = vector.load %arg9[%c0_30, %c0_31] : memref<32x32xbf16, #tpu.memory_space<vmem>>, vector<32x32xbf16>
    %cst_32 = arith.constant dense<0.000000e+00> : vector<8x32xf32>
    %64 = tpu.matmul %57, %63, %cst_32 {dimension_numbers = #tpu.dot_dimension_numbers<[1], [0], [0], [1], [0, 0, 1, 1], [], []>} : vector<8x32xbf16>, vector<32x32xbf16>, vector<8x32xf32> -> vector<8x32xf32>
    %c0_33 = arith.constant 0 : index
    %c0_34 = arith.constant 0 : index
    %65 = vector.load %arg10[%c0_33, %c0_34] : memref<1x32xf32, #tpu.memory_space<vmem>>, vector<1x32xf32>
    %66 = vector.broadcast %65 : vector<1x32xf32> to vector<8x32xf32>
    %67 = arith.addf %64, %66 : vector<8x32xf32>
    %c0_35 = arith.constant 0 : index
    %c0_36 = arith.constant 0 : index
    %68 = vector.load %arg11[%c0_35, %c0_36] : memref<32x32xbf16, #tpu.memory_space<vmem>>, vector<32x32xbf16>
    %cst_37 = arith.constant dense<0.000000e+00> : vector<8x32xf32>
    %69 = tpu.matmul %57, %68, %cst_37 {dimension_numbers = #tpu.dot_dimension_numbers<[1], [0], [0], [1], [0, 0, 1, 1], [], []>} : vector<8x32xbf16>, vector<32x32xbf16>, vector<8x32xf32> -> vector<8x32xf32>
    %c0_38 = arith.constant 0 : index
    %c0_39 = arith.constant 0 : index
    %70 = vector.load %arg12[%c0_38, %c0_39] : memref<1x32xf32, #tpu.memory_space<vmem>>, vector<1x32xf32>
    %71 = vector.broadcast %70 : vector<1x32xf32> to vector<8x32xf32>
    %72 = arith.addf %69, %71 : vector<8x32xf32>
    %73 = vector.extract_strided_slice %62 {offsets = [0, 0], sizes = [8, 8], strides = [1, 1]} : vector<8x32xf32> to vector<8x8xf32>
    %74 = vector.extract_strided_slice %62 {offsets = [0, 8], sizes = [8, 8], strides = [1, 1]} : vector<8x32xf32> to vector<8x8xf32>
    %75 = vector.extract_strided_slice %62 {offsets = [0, 16], sizes = [8, 8], strides = [1, 1]} : vector<8x32xf32> to vector<8x8xf32>
    %76 = vector.extract_strided_slice %62 {offsets = [0, 24], sizes = [8, 8], strides = [1, 1]} : vector<8x32xf32> to vector<8x8xf32>
    %77 = vector.shape_cast %73 : vector<8x8xf32> to vector<1x8x8xf32>
    %78 = vector.shape_cast %74 : vector<8x8xf32> to vector<1x8x8xf32>
    %79 = vector.shape_cast %75 : vector<8x8xf32> to vector<1x8x8xf32>
    %80 = vector.shape_cast %76 : vector<8x8xf32> to vector<1x8x8xf32>
    %81 = tpu.concatenate %77, %78, %79, %80 in 0 : vector<1x8x8xf32>, vector<1x8x8xf32>, vector<1x8x8xf32>, vector<1x8x8xf32> -> vector<4x8x8xf32>
    %82 = arith.truncf %81 : vector<4x8x8xf32> to vector<4x8x8xbf16>
    %83 = vector.extract_strided_slice %67 {offsets = [0, 0], sizes = [8, 8], strides = [1, 1]} : vector<8x32xf32> to vector<8x8xf32>
    %84 = vector.extract_strided_slice %67 {offsets = [0, 8], sizes = [8, 8], strides = [1, 1]} : vector<8x32xf32> to vector<8x8xf32>
    %85 = vector.extract_strided_slice %67 {offsets = [0, 16], sizes = [8, 8], strides = [1, 1]} : vector<8x32xf32> to vector<8x8xf32>
    %86 = vector.extract_strided_slice %67 {offsets = [0, 24], sizes = [8, 8], strides = [1, 1]} : vector<8x32xf32> to vector<8x8xf32>
    %87 = vector.shape_cast %83 : vector<8x8xf32> to vector<1x8x8xf32>
    %88 = vector.shape_cast %84 : vector<8x8xf32> to vector<1x8x8xf32>
    %89 = vector.shape_cast %85 : vector<8x8xf32> to vector<1x8x8xf32>
    %90 = vector.shape_cast %86 : vector<8x8xf32> to vector<1x8x8xf32>
    %91 = tpu.concatenate %87, %88, %89, %90 in 0 : vector<1x8x8xf32>, vector<1x8x8xf32>, vector<1x8x8xf32>, vector<1x8x8xf32> -> vector<4x8x8xf32>
    %92 = arith.truncf %91 : vector<4x8x8xf32> to vector<4x8x8xbf16>
    %93 = vector.extract_strided_slice %72 {offsets = [0, 0], sizes = [8, 8], strides = [1, 1]} : vector<8x32xf32> to vector<8x8xf32>
    %94 = vector.extract_strided_slice %72 {offsets = [0, 8], sizes = [8, 8], strides = [1, 1]} : vector<8x32xf32> to vector<8x8xf32>
    %95 = vector.extract_strided_slice %72 {offsets = [0, 16], sizes = [8, 8], strides = [1, 1]} : vector<8x32xf32> to vector<8x8xf32>
    %96 = vector.extract_strided_slice %72 {offsets = [0, 24], sizes = [8, 8], strides = [1, 1]} : vector<8x32xf32> to vector<8x8xf32>
    %97 = vector.shape_cast %93 : vector<8x8xf32> to vector<1x8x8xf32>
    %98 = vector.shape_cast %94 : vector<8x8xf32> to vector<1x8x8xf32>
    %99 = vector.shape_cast %95 : vector<8x8xf32> to vector<1x8x8xf32>
    %100 = vector.shape_cast %96 : vector<8x8xf32> to vector<1x8x8xf32>
    %101 = tpu.concatenate %97, %98, %99, %100 in 0 : vector<1x8x8xf32>, vector<1x8x8xf32>, vector<1x8x8xf32>, vector<1x8x8xf32> -> vector<4x8x8xf32>
    %102 = arith.truncf %101 : vector<4x8x8xf32> to vector<4x8x8xbf16>
    "tpu.trace_start"() <{level = 10 : i32, message = "hqc,hkc->hqk"}> : () -> ()
    %cst_40 = arith.constant dense<0.000000e+00> : vector<4x8x8xf32>
    %103 = tpu.matmul %82, %92, %cst_40 {dimension_numbers = #tpu.dot_dimension_numbers<[2], [2], [1], [1], [0, 0, 0, 1, 1, 1], [0], [0]>} : vector<4x8x8xbf16>, vector<4x8x8xbf16>, vector<4x8x8xf32> -> vector<4x8x8xf32>
    "tpu.trace_stop"() : () -> ()
    %cst_41 = arith.constant 0.353553385 : f32
    %104 = vector.broadcast %cst_41 : f32 to vector<4x8x8xf32>
    %105 = arith.mulf %103, %104 : vector<4x8x8xf32>
    %106 = vector.shape_cast %5 : vector<8x8xf32> to vector<1x8x8xf32>
    %cst_42 = arith.constant 0.000000e+00 : f32
    %107 = vector.broadcast %cst_42 : f32 to vector<1x8x8xf32>
    %108 = arith.cmpf oeq, %106, %107 : vector<1x8x8xf32>
    %cst_43 = arith.constant -1.000000e+09 : f32
    %109 = vector.shape_cast %108 : vector<1x8x8xi1> to vector<1x8x8xi1>
    %110 = vector.broadcast %109 : vector<1x8x8xi1> to vector<4x8x8xi1>
    %111 = vector.broadcast %cst_43 : f32 to vector<4x8x8xf32>
    %112 = arith.select %110, %111, %105 : vector<4x8x8xi1>, vector<4x8x8xf32>
    %cst_44 = arith.constant dense<0xFF800000> : vector<4x8xf32>
    %113 = vector.multi_reduction <maximumf>, %112, %cst_44 [2] : vector<4x8x8xf32> to vector<4x8xf32>
    %114 = vector.shape_cast %113 : vector<4x8xf32> to vector<4x8x1xf32>
    %115 = vector.broadcast %114 : vector<4x8x1xf32> to vector<4x8x8xf32>
    %116 = arith.subf %112, %115 : vector<4x8x8xf32>
    %117 = math.exp %116 : vector<4x8x8xf32>
    %cst_45 = arith.constant dense<0.000000e+00> : vector<4x8xf32>
    %118 = vector.multi_reduction <add>, %117, %cst_45 [2] : vector<4x8x8xf32> to vector<4x8xf32>
    %119 = vector.shape_cast %118 : vector<4x8xf32> to vector<4x8x1xf32>
    %120 = tpu.reciprocal %119 {approx = true} : vector<4x8x1xf32> -> vector<4x8x1xf32>
    %121 = vector.broadcast %120 : vector<4x8x1xf32> to vector<4x8x8xf32>
    %122 = arith.mulf %117, %121 : vector<4x8x8xf32>
    %123 = arith.truncf %122 : vector<4x8x8xf32> to vector<4x8x8xbf16>
    "tpu.trace_start"() <{level = 10 : i32, message = "hqk,hkc->hqc"}> : () -> ()
    %cst_46 = arith.constant dense<0.000000e+00> : vector<4x8x8xf32>
    %124 = tpu.matmul %123, %102, %cst_46 {dimension_numbers = #tpu.dot_dimension_numbers<[2], [1], [1], [2], [0, 0, 0, 1, 1, 2], [0], [0]>} : vector<4x8x8xbf16>, vector<4x8x8xbf16>, vector<4x8x8xf32> -> vector<4x8x8xf32>
    "tpu.trace_stop"() : () -> ()
    %125 = arith.truncf %124 : vector<4x8x8xf32> to vector<4x8x8xbf16>
    %c0_47 = arith.constant 0 : index
    %c0_48 = arith.constant 0 : index
    %c0_49 = arith.constant 0 : index
    %126 = vector.load %arg13[%c0_47, %c0_48, %c0_49] : memref<4x8x32xbf16, #tpu.memory_space<vmem>>, vector<4x8x32xbf16>
    "tpu.trace_start"() <{level = 10 : i32, message = "hqc,hcd->hqd"}> : () -> ()
    %cst_50 = arith.constant dense<0.000000e+00> : vector<4x8x32xf32>
    %127 = tpu.matmul %125, %126, %cst_50 {dimension_numbers = #tpu.dot_dimension_numbers<[2], [1], [1], [2], [0, 0, 0, 1, 1, 2], [0], [0]>} : vector<4x8x8xbf16>, vector<4x8x32xbf16>, vector<4x8x32xf32> -> vector<4x8x32xf32>
    "tpu.trace_stop"() : () -> ()
    %cst_51 = arith.constant dense<0.000000e+00> : vector<8x32xf32>
    %128 = vector.multi_reduction <add>, %127, %cst_51 [0] : vector<4x8x32xf32> to vector<8x32xf32>
    %c0_52 = arith.constant 0 : index
    %c0_53 = arith.constant 0 : index
    %129 = vector.load %arg14[%c0_52, %c0_53] : memref<1x32xf32, #tpu.memory_space<vmem>>, vector<1x32xf32>
    %130 = vector.broadcast %129 : vector<1x32xf32> to vector<8x32xf32>
    %131 = arith.addf %128, %130 : vector<8x32xf32>
    %132 = arith.addf %1, %131 : vector<8x32xf32>
    %c0_54 = arith.constant 0 : index
    %c0_55 = arith.constant 0 : index
    %c0_56 = arith.constant 0 : index
    %133 = vector.load %arg15[%c0_54, %c0_55, %c0_56] : memref<1x8x32xf32, #tpu.memory_space<vmem>>, vector<1x8x32xf32>
    %134 = vector.shape_cast %133 : vector<1x8x32xf32> to vector<8x32xf32>
    %135 = vector.shape_cast %132 : vector<8x32xf32> to vector<1x8x32xf32>
    tpu.vector_store %arg15[%c0_54, %c0_55, %c0_56], %135 {strides = array<i32>} : memref<1x8x32xf32, #tpu.memory_space<vmem>>, vector<1x8x32xf32>,
    return
  }
  func.func @transform_0(%arg0: i32, %arg1: i32) -> (i32, i32, i32) {
    %c0_i32 = arith.constant 0 : i32
    %c0_i32_0 = arith.constant 0 : i32
    return %arg0, %arg1, %c0_i32 : i32, i32, i32
  }
  func.func @transform_1(%arg0: i32, %arg1: i32) -> (i32, i32, i32) {
    %c0_i32 = arith.constant 0 : i32
    %c0_i32_0 = arith.constant 0 : i32
    %c0_i32_1 = arith.constant 0 : i32
    return %arg0, %c0_i32, %c0_i32_0 : i32, i32, i32
  }
  func.func @transform_2(%arg0: i32, %arg1: i32) -> (i32, i32, i32) {
    %c0_i32 = arith.constant 0 : i32
    %c0_i32_0 = arith.constant 0 : i32
    return %arg0, %arg1, %c0_i32 : i32, i32, i32
  }
  func.func @transform_3(%arg0: i32, %arg1: i32) -> (i32, i32) {
    %c0_i32 = arith.constant 0 : i32
    %c0_i32_0 = arith.constant 0 : i32
    %c0_i32_1 = arith.constant 0 : i32
    return %c0_i32, %c0_i32_0 : i32, i32
  }
  func.func @transform_4(%arg0: i32, %arg1: i32) -> (i32, i32) {
    %c0_i32 = arith.constant 0 : i32
    %c0_i32_0 = arith.constant 0 : i32
    %c0_i32_1 = arith.constant 0 : i32
    return %c0_i32, %c0_i32_0 : i32, i32
  }
  func.func @transform_5(%arg0: i32, %arg1: i32) -> (i32, i32) {
    %c0_i32 = arith.constant 0 : i32
    %c0_i32_0 = arith.constant 0 : i32
    %c0_i32_1 = arith.constant 0 : i32
    return %c0_i32, %c0_i32_0 : i32, i32
  }
  func.func @transform_6(%arg0: i32, %arg1: i32) -> (i32, i32) {
    %c0_i32 = arith.constant 0 : i32
    %c0_i32_0 = arith.constant 0 : i32
    %c0_i32_1 = arith.constant 0 : i32
    return %c0_i32, %c0_i32_0 : i32, i32
  }
  func.func @transform_7(%arg0: i32, %arg1: i32) -> (i32, i32) {
    %c0_i32 = arith.constant 0 : i32
    %c0_i32_0 = arith.constant 0 : i32
    %c0_i32_1 = arith.constant 0 : i32
    return %c0_i32, %c0_i32_0 : i32, i32
  }
  func.func @transform_8(%arg0: i32, %arg1: i32) -> (i32, i32) {
    %c0_i32 = arith.constant 0 : i32
    %c0_i32_0 = arith.constant 0 : i32
    %c0_i32_1 = arith.constant 0 : i32
    return %c0_i32, %c0_i32_0 : i32, i32
  }
  func.func @transform_9(%arg0: i32, %arg1: i32) -> (i32, i32) {
    %c0_i32 = arith.constant 0 : i32
    %c0_i32_0 = arith.constant 0 : i32
    %c0_i32_1 = arith.constant 0 : i32
    return %c0_i32, %c0_i32_0 : i32, i32
  }
  func.func @transform_10(%arg0: i32, %arg1: i32) -> (i32, i32) {
    %c0_i32 = arith.constant 0 : i32
    %c0_i32_0 = arith.constant 0 : i32
    %c0_i32_1 = arith.constant 0 : i32
    return %c0_i32, %c0_i32_0 : i32, i32
  }
  func.func @transform_11(%arg0: i32, %arg1: i32) -> (i32, i32, i32) {
    %c0_i32 = arith.constant 0 : i32
    %c0_i32_0 = arith.constant 0 : i32
    %c0_i32_1 = arith.constant 0 : i32
    %c0_i32_2 = arith.constant 0 : i32
    return %c0_i32, %c0_i32_0, %c0_i32_1 : i32, i32, i32
  }
  func.func @transform_12(%arg0: i32, %arg1: i32) -> (i32, i32) {
    %c0_i32 = arith.constant 0 : i32
    %c0_i32_0 = arith.constant 0 : i32
    %c0_i32_1 = arith.constant 0 : i32
    return %c0_i32, %c0_i32_0 : i32, i32
  }
  func.func @transform_13(%arg0: i32, %arg1: i32) -> (i32, i32, i32) {
    %c0_i32 = arith.constant 0 : i32
    %c0_i32_0 = arith.constant 0 : i32
    return %arg0, %arg1, %c0_i32 : i32, i32, i32
  }
}

</mosaic_0001>

<bundles_post_ra>
// kernel: tpu_custom_call.1
= control target key start
LH: loop header
LB: loop body
LE: loop exit
PB: predicated region body
PF: predicated region fallthrough
CT: control target
= control target key end

     0   :  { %s2943_s0 = inlined_call_operand.hbm [shape: f32[2,8,32], index: 0, kind: input, shape index: {}]   ;;  %s2944_s1 = inlined_call_operand.hbm [shape: f32[2,8,32], index: 1, kind: input, shape index: {}]   ;;  %s2945_s2 = inlined_call_operand.hbm [shape: f32[2,8,8], index: 2, kind: input, shape index: {}]   ;;  %s2946_s3 = inlined_call_operand.vmem [shape: f32[1,32], index: 3, kind: input, shape index: {}]   ;;  %s2947_s4 = inlined_call_operand.vmem [shape: f32[1,32], index: 4, kind: input, shape index: {}]   ;;  %s2948_s5 = inlined_call_operand.vmem [shape: bf16[32,32], index: 5, kind: input, shape index: {}]   ;;  %s2949_s6 = inlined_call_operand.hbm [shape: f32[1,32], index: 6, kind: input, shape index: {}]   ;;  %s2950_s7 = inlined_call_operand.hbm [shape: bf16[32,32], index: 7, kind: input, shape index: {}]   ;;  %s2951_s8 = inlined_call_operand.hbm [shape: f32[1,32], index: 8, kind: input, shape index: {}]   ;;  %s2952_s9 = inlined_call_operand.vmem [shape: bf16[32,32], index: 9, kind: input, shape index: {}]   ;;  %s2953_s10 = inlined_call_operand.vmem [shape: f32[1,32], index: 10, kind: input, shape index: {}]   ;;  %s2954_s11 = inlined_call_operand.hbm [shape: bf16[4,8,32], index: 11, kind: input, shape index: {}]   ;;  %s2955_s12 = inlined_call_operand.vmem [shape: f32[1,32], index: 12, kind: input, shape index: {}]   ;;  %s2956_s13 = inlined_call_operand.hbm [shape: f32[2,8,32], index: 13, kind: output, shape index: {}]  }
   0x1   :  { %2981 = sst [smem:[#allocation28_spill]] %s2944_s1 }
   0x2   :  { %2982 = sst [smem:[#allocation29_spill]] %s2946_s3 }
   0x3   :  { %2983 = sst [smem:[#allocation30_spill]] %s2947_s4 }
   0x4   :  { %2984 = sst [smem:[#allocation31_spill]] %s2948_s5 }
   0x5   :  { %2985 = sst [smem:[#allocation32_spill]] %s2949_s6 }
   0x6   :  { %2986 = sst [smem:[#allocation33_spill]] %s2951_s8 }
   0x7   :  { %2987 = sst [smem:[#allocation34_spill]] %s2952_s9 }
   0x8   :  { %2988 = sst [smem:[#allocation35_spill]] %s2953_s10 }
   0x9   :  { %2989 = sst [smem:[#allocation36_spill]] %s2955_s12 }
   0xa   :  { %2990 = sst [smem:[#allocation37_spill]] %s2956_s13 }
   0xb   :  { %18 = vsyncpa [#allocation3], 0 }
   0xc   :  { %20 = vsyncpa [#allocation3 + $0x1], 0 }
   0xd   :  { %21 = vsyncpa [#allocation6], 0 }
   0xe   :  { %23 = vsyncpa [#allocation6 + $0x1], 0 }
   0xf   :  { %24 = vsyncpa [#allocation9], 0 }
  0x10   :  { %25 = vsyncpa [#allocation12], 0 }
  0x11   :  { %26 = vsyncpa [#allocation4], 0 }
  0x12   :  { %28 = vsyncpa [#allocation4 + $0x1], 0  ;;  %s2436_s25 = smov 0   ;;  %s2438_s26 = smov 0  }
  0x13   :  { %s2440_s27 = smov 0   ;;  %s2442_s28 = smov 0  }
  0x14   :  { %s2444_s29 = smov 0   ;;  %s2446_s30 = smov 0  }
  0x15 LB: > { %2991 = sst [smem:[#allocation20_spill]] %s2329_s25  ;;  %s2467_s14 = sadd.s32 4294967295, %s2349_s30   ;;  %s2349_s30 = sphi %s2446_s30, %s34_s30   ;;  %s2345_s29 = sphi %s2444_s29, %s3041_s29   ;;  %s2341_s28 = sphi %s2442_s28, %s3040_s28   ;;  %s2337_s27 = sphi %s2440_s27, %s3044_s27   ;;  %s2333_s26 = sphi %s2438_s26, %s3043_s26   ;;  %s2329_s25 = sphi %s2436_s25, %s3042_s25  }
  0x16   : > { %2992 = sst [smem:[#allocation21_spill]] %s2341_s28  ;;  %p1722_p0 = scmp.ge.s32.totalorder %s2349_s30, 1 }
  0x17   : > { %2993 = sst [smem:[#allocation22_spill]] %s2345_s29  ;;  %p2958_p1 = scmp.eq.s32.totalorder %s2467_s14, 0 }
  0x18   : > { %2994 = sst [smem:[#allocation23_spill]] %s2349_s30  ;;  %p371_p2 = scmp.lt.s32.totalorder %s2349_s30, 3 }
  0x19   : > { %s2351_s16 = smov [#allocation8]   ;;  %s2352_s18 = smov [#allocation11]  }
  0x1a   : > { %p2472_p3 = pnand %p1722_p0, %p371_p2  ;;  %s393_s17 = sshll.u32 %s2351_s16, 4  ;;  %s394_s17 = int_to_ptr.vmem [resolvable:$true] %s393_s17 }
  0x1b   : > { %s417_s19 = sshll.u32 %s2352_s18, 4  ;;  %s2997_s6 = sld [smem:[#allocation32_spill]]  ;;  %s2485_s19 = int_to_ptr.vmem [resolvable:$true] %s417_s19 }
  0x1c   : > { %s2995_s15 = scalar_select %p2472_p3, 1, 0 }
  0x1d   : > { %p1927_p5 = pneg %p2472_p3 }
  0x1f   : > { %p2481_p6 = pnand %p1927_p5, %p2958_p1 }
  0x21   : > { %s2996_s20 = scalar_select %p2481_p6, 1, 0 }
  0x22   : > { %s2053_s23 = scalar_lea.hbm %s2997_s6, 16  ;;  %p2495_p8 = pneg %p2481_p6 }
  0x23   : > { %p2054_p7 = scmp.ne.s32.totalorder %s2997_s6, %s2053_s23  ;;  %p2060_p11 = scmp.lt.u32.totalorder %s2053_s23, %s2997_s6 }
  0x24   : > { %s2998_s13 = scalar_select %p2495_p8, 1, 0 }
  0x25   : > { %p2056_p9 = pnand %p2495_p8, %p2054_p7 }
  0x27   : > { %p2057_p10 = pneg %p2056_p9 }
  0x29   : > { %p2062_p12 = pnand %p2060_p11, %p2057_p10 }
  0x2b   : > { %2065 = shalt.err (!%p2062_p12)
}
  0x2c   : > { %s2066_s21 = scalar_lea.vmem %s394_s17, 16  ;;  %s2073_s22 = scalar_lea.vmem %s394_s17, 32 }
  0x2d   : > { %p2067_p13 = scmp.ne.s32.totalorder %s394_s17, %s2066_s21  ;;  %p2074_p5 = scmp.lt.s32.totalorder %s394_s17, %s394_s17 }
  0x2e   : > { %p2075_p4 = scmp.lt.s32.totalorder %s2073_s22, %s2066_s21 }
  0x2f   : > { %p2069_p0 = pnand %p2067_p13, %p2495_p8 }
  0x30   : > { %p2076_p1 = por %p2075_p4, %p2074_p5 }
  0x31   : > { %p2070_p2 = pneg %p2069_p0 }
  0x33   : > { %p2077_p3 = pnand %p2076_p1, %p2070_p2 }
  0x35   : > { %2080 = shalt.err (!%p2077_p3)
}
  0x36   : > { %1930 = dma.hbm_to_vmem [thread:$0]  (!%p2481_p6), %s2997_s6, 16, %s394_s17, [#allocation9]  }
  0x37   : > { %s2999_s8 = sld [smem:[#allocation33_spill]] }
  0x3d   : > { %s2081_s18 = scalar_lea.hbm %s2999_s8, 16 }
  0x3e   : > { %p2082_p7 = scmp.ne.s32.totalorder %s2999_s8, %s2081_s18  ;;  %p2088_p1 = scmp.lt.u32.totalorder %s2081_s18, %s2999_s8 }
  0x40   : > { %p2084_p9 = pnand %p2082_p7, %p2495_p8 }
  0x42   : > { %p2085_p4 = pneg %p2084_p9 }
  0x44   : > { %p2090_p3 = pnand %p2088_p1, %p2085_p4 }
  0x46   : > { %2093 = shalt.err (!%p2090_p3)
}
  0x47   : > { %s2094_s17 = scalar_lea.vmem %s2485_s19, 16  ;;  %s2101_s10 = scalar_lea.vmem %s2485_s19, 32 }
  0x48   : > { %p2095_p10 = scmp.ne.s32.totalorder %s2485_s19, %s2094_s17  ;;  %p2102_p13 = scmp.lt.s32.totalorder %s2485_s19, %s2485_s19 }
  0x49   : > { %p2103_p0 = scmp.lt.s32.totalorder %s2101_s10, %s2094_s17 }
  0x4a   : > { %p2097_p11 = pnand %p2095_p10, %p2495_p8 }
  0x4b   : > { %p2104_p2 = por %p2103_p0, %p2102_p13 }
  0x4c   : > { %p2098_p12 = pneg %p2097_p11 }
  0x4e   : > { %p2105_p5 = pnand %p2104_p2, %p2098_p12 }
  0x50   : > { %2108 = shalt.err (!%p2105_p5)
}
  0x51   : > { %1936 = dma.hbm_to_vmem [thread:$0]  (!%p2481_p6), %s2999_s8, 16, %s2485_s19, [#allocation12]  }
  0x52   : > { %s1721_s16 = sadd.s32 4294967294, %s2349_s30   ;;  %s46_s12 = sadd.s32 1, %s2345_s29 }
  0x53   : > { %p48_p7 = scmp.ge.s32.totalorder %s46_s12, 2  ;;  %s55_s23 = sadd.s32 1, %s2337_s27 }
  0x54   : > { %p62_p9 = scmp.ne.s32.totalorder %s2337_s27, %s2333_s26  ;;  %p63_p4 = scmp.eq.s32.totalorder %s2349_s30, 0 }
  0x55   : > { %s3046_s12 = smov (%p48_p7, %s46_s12), 0  ;;  %p68_p3 = scmp.ne.s32.totalorder %s2333_s26, %s2329_s25 }
  0x56   : > { %3000 = sst [smem:[#allocation24_spill]] %s3046_s12  ;;  %p2543_p1 = por %p63_p4, %p62_p9 }
  0x57   : > { %s50_s19 = ssub.s32 %s2345_s29, %s3046_s12  ;;  %p358_p10 = scmp.eq.s32.totalorder %s2467_s14, 1 }
  0x58   : > { %p53_p11 = scmp.eq.s32.totalorder %s50_s19, 0  ;;  %p3002_p12 = scmp.eq.s32.totalorder %s2467_s14, 0 }
  0x59   : > { %p2558_p0 = por %p358_p10, %p62_p9  ;;  %p364_p2 = scmp.eq.s32.totalorder %s1721_s16, 1 }
  0x5a   : > { %p2554_p13 = por %p3002_p12, %p68_p3  ;;  %p1958_p7 = scmp.lt.s32.totalorder %s2349_s30, 2 }
  0x5b   : > { %s3004_s22 = scalar_select %p2558_p0, 1, 0 }
  0x5c   : > { %s3003_s21 = scalar_select %p2554_p13, 1, 0 }
  0x5d   : > { %3005 = sst [smem:[#allocation25_spill]] %s3004_s22  ;;  %p2565_p5 = por %p364_p2, %p68_p3 }
  0x5e   : > { %s2563_s17 = scalar_select %p53_p11, %s2337_s27, %s55_s23  }
  0x5f   : > { %s3007_s10 = scalar_select %p2565_p5, 1, 0 }
  0x60   : > { %3006 = sst [smem:[#allocation26_spill]] %s2563_s17  ;;  %s2962_s28 = sand.u32 1, %s2337_s27  }
  0x61   : > { %3008 = sst [smem:[#allocation27_spill]] %s3007_s10  ;;  %s2572_s24 = sshll.u32 %s2345_s29, 7 }
  0x62   : > { %s2576_s19 = sshll.u32 %s2962_s28, 3  ;;  %p2580_p9 = pnand %p1958_p7, %p2543_p1 }
  0x63   : > { %s469_s16 = sand.u32 1, %s2349_s30   ;;  %s3010_s1 = sld [smem:[#allocation28_spill]] }
  0x64   : > { %s3009_s6 = scalar_select %p2580_p9, 1, 0 }
  0x65   : > { %s473_s29 = scalar_lea.vmem [#allocation5], %s2576_s19  ;;  %s2594_s18 = scalar_lea.sflag [#allocation6], %s469_s16 }
  0x66   : > { %s480_s28 = sshll.u32 %s473_s29, 4  ;;  %p2600_p1 = pneg %p2580_p9  ;;  %s2592_s28 = int_to_ptr.vmem [resolvable:$true] %s480_s28 }
  0x68   : > { %s3011_s30 = scalar_select %p2600_p1, 1, 0 }
  0x69   : > { %s2589_s12 = scalar_lea.hbm %s3010_s1, %s2572_s24  ;;  %s2114_s10 = scalar_lea.hbm %s3010_s1, 256 }
  0x6a   : > { %s2109_s17 = scalar_lea.hbm %s2589_s12, 128  ;;  %p2115_p11 = scmp.lt.u32.totalorder %s2589_s12, %s3010_s1 }
  0x6b   : > { %p2110_p4 = scmp.ne.s32.totalorder %s2589_s12, %s2109_s17  ;;  %p2116_p12 = scmp.lt.u32.totalorder %s2114_s10, %s2109_s17 }
  0x6c   : > { %p2118_p7 = scmp.lt.u32.totalorder %s2109_s17, %s2589_s12 }
  0x6d   : > { %p2112_p3 = pnand %p2600_p1, %p2110_p4  ;;  %p2117_p2 = por %p2116_p12, %p2115_p11 }
  0x6f   : > { %p2113_p10 = pneg %p2112_p3  ;;  %p2119_p5 = por %p2118_p7, %p2117_p2 }
  0x71   : > { %p2120_p0 = pnand %p2119_p5, %p2113_p10 }
  0x73   : > { %2123 = shalt.err (!%p2120_p0)
}
  0x74   : > { %s2124_s16 = scalar_lea.vmem %s2592_s28, 128  ;;  %s2353_s8 = smov [#allocation5]  }
  0x75   : > { %p2125_p4 = scmp.ne.s32.totalorder %s2592_s28, %s2124_s16  ;;  %s2129_s23 = sshll.u32 %s2353_s8, 4  ;;  %s2130_s23 = int_to_ptr.vmem [resolvable:$false] %s2129_s23 }
  0x76   : > { %s2131_s25 = scalar_lea.vmem %s2130_s23, 256  ;;  %p2132_p6 = scmp.lt.s32.totalorder %s2592_s28, %s2130_s23 }
  0x77   : > { %p2127_p3 = pnand %p2125_p4, %p2600_p1  ;;  %p2133_p8 = scmp.lt.s32.totalorder %s2131_s25, %s2124_s16 }
  0x79   : > { %p2128_p13 = pneg %p2127_p3  ;;  %p2134_p11 = por %p2133_p8, %p2132_p6 }
  0x7b   : > { %p2135_p12 = pnand %p2134_p11, %p2128_p13 }
  0x7d   : > { %2138 = shalt.err (!%p2135_p12)
}
  0x7e   : > { %1946 = dma.hbm_to_vmem [thread:$0]  (!%p2580_p9), %s2589_s12, 128, %s2592_s28, %s2594_s18  }
  0x7f   : > { %s2354_s17 = smov [#allocation10]   ;;  %s2139_s8 = scalar_lea.hbm %s2950_s7, 256 }
  0x80   : > { %s403_s10 = sshll.u32 %s2354_s17, 4  ;;  %p2140_p6 = scmp.ne.s32.totalorder %s2950_s7, %s2139_s8  ;;  %s404_s10 = int_to_ptr.vmem [resolvable:$true] %s403_s10 }
  0x81   : > { %p3012_p8 = scmp.ne.s32.totalorder %s2998_s13, 0  ;;  %p2146_p5 = scmp.lt.u32.totalorder %s2139_s8, %s2950_s7 }
  0x83   : > { %p2142_p13 = pnand %p2140_p6, %p3012_p8 }
  0x85   : > { %p2143_p0 = pneg %p2142_p13 }
  0x87   : > { %p2148_p10 = pnand %p2146_p5, %p2143_p0 }
  0x89   : > { %2151 = shalt.err (!%p2148_p10)
}
  0x8a   : > { %s2152_s12 = scalar_lea.vmem %s404_s10, 256  ;;  %p2160_p3 = scmp.lt.s32.totalorder %s404_s10, %s404_s10 }
  0x8b   : > { %p2153_p2 = scmp.ne.s32.totalorder %s404_s10, %s2152_s12  ;;  %p2161_p11 = scmp.lt.s32.totalorder %s2152_s12, %s2152_s12 }
  0x8d   : > { %p2155_p7 = pnand %p2153_p2, %p3012_p8  ;;  %p2162_p12 = por %p2161_p11, %p2160_p3 }
  0x8f   : > { %p2156_p4 = pneg %p2155_p7 }
  0x91   : > { %p2163_p9 = pnand %p2162_p12, %p2156_p4 }
  0x93   : > { %2166 = shalt.err (!%p2163_p9)
}
  0x94   : > { %s2355_s1 = smov 64   ;;  %s2356_s22 = smov 4  }
  0x95   : > { %p3013_p6 = scmp.ne.s32.totalorder %s2996_s20, 0  ;;  %s2357_s29 = smov [#allocation13]  }
  0x96   : > { %s433_s8 = sshll.u32 %s2357_s29, 4  ;;  %s2646_s25 = scalar_lea.hbm %s2943_s0, %s2572_s24  ;;  %s434_s8 = int_to_ptr.vmem [resolvable:$true] %s433_s8 }
  0x97   : > { %1933 = dma.hbm_to_vmem [thread:$0]  (!%p3013_p6), %s2950_s7, 256, %s404_s10, [#allocation9], %s2355_s1, %s2355_s1, %s2356_s22  }
  0x98   : > { %s2167_s4 = scalar_lea.hbm %s2954_s11, 256 }
  0x99   : > { %p2168_p9 = scmp.ne.s32.totalorder %s2954_s11, %s2167_s4  ;;  %p2174_p5 = scmp.lt.u32.totalorder %s2167_s4, %s2954_s11 }
  0x9b   : > { %p2170_p13 = pnand %p2168_p9, %p3012_p8 }
  0x9d   : > { %p2171_p0 = pneg %p2170_p13 }
  0x9f   : > { %p2176_p10 = pnand %p2174_p5, %p2171_p0 }
  0xa1   : > { %2179 = shalt.err (!%p2176_p10)
}
  0xa2   : > { %s2180_s17 = scalar_lea.vmem %s434_s8, 256  ;;  %p2188_p3 = scmp.lt.s32.totalorder %s434_s8, %s434_s8 }
  0xa3   : > { %p2181_p2 = scmp.ne.s32.totalorder %s434_s8, %s2180_s17  ;;  %p2189_p11 = scmp.lt.s32.totalorder %s2180_s17, %s2180_s17 }
  0xa5   : > { %p2183_p7 = pnand %p2181_p2, %p3012_p8  ;;  %p2190_p12 = por %p2189_p11, %p2188_p3 }
  0xa7   : > { %p2184_p4 = pneg %p2183_p7 }
  0xa9   : > { %p2191_p1 = pnand %p2190_p12, %p2184_p4 }
  0xab   : > { %2194 = shalt.err (!%p2191_p1)
}
  0xac   : > { %1939 = dma.hbm_to_vmem [thread:$0]  (!%p3013_p6), %s2954_s11, 256, %s434_s8, [#allocation12], %s2355_s1, %s2355_s1, %s2356_s22  }
  0xad   : > { %s454_s4 = scalar_lea.vmem [#allocation2], %s2576_s19  ;;  %s2673_s20 = scalar_lea.hbm %s2945_s2, %s2572_s24 }
  0xae   : > { %s462_s9 = sshll.u32 %s454_s4, 4  ;;  %s3014_s23 = sand.u32 1, %s2337_s27   ;;  %s2667_s9 = int_to_ptr.vmem [resolvable:$true] %s462_s9 }
  0xaf   : > { %s451_s16 = scalar_lea.sflag [#allocation3], %s3014_s23  ;;  %s2195_s12 = scalar_lea.hbm %s2646_s25, 128 }
  0xb0   : > { %p2196_p1 = scmp.ne.s32.totalorder %s2646_s25, %s2195_s12  ;;  %p3015_p8 = scmp.ne.s32.totalorder %s3011_s30, 0 }
  0xb1   : > { %s2200_s1 = scalar_lea.hbm %s2943_s0, 256  ;;  %p2201_p6 = scmp.lt.u32.totalorder %s2646_s25, %s2943_s0 }
  0xb2   : > { %p2198_p9 = pnand %p2196_p1, %p3015_p8  ;;  %p2202_p0 = scmp.lt.u32.totalorder %s2200_s1, %s2195_s12 }
  0xb3   : > { %p2204_p10 = scmp.lt.u32.totalorder %s2195_s12, %s2646_s25 }
  0xb4   : > { %p2199_p13 = pneg %p2198_p9  ;;  %p2203_p5 = por %p2202_p0, %p2201_p6 }
  0xb6   : > { %p2205_p2 = por %p2204_p10, %p2203_p5 }
  0xb8   : > { %p2206_p7 = pnand %p2205_p2, %p2199_p13 }
  0xba   : > { %2209 = shalt.err (!%p2206_p7)
}
  0xbb   : > { %s2210_s24 = scalar_lea.vmem %s2667_s9, 128  ;;  %s2358_s17 = smov [#allocation2]  }
  0xbc   : > { %p2211_p4 = scmp.ne.s32.totalorder %s2667_s9, %s2210_s24  ;;  %s2215_s3 = sshll.u32 %s2358_s17, 4  ;;  %s2216_s3 = int_to_ptr.vmem [resolvable:$false] %s2215_s3 }
  0xbd   : > { %s2217_s5 = scalar_lea.vmem %s2216_s3, 256  ;;  %p2218_p12 = scmp.lt.s32.totalorder %s2667_s9, %s2216_s3 }
  0xbe   : > { %p2213_p3 = pnand %p2211_p4, %p3015_p8  ;;  %p2219_p1 = scmp.lt.s32.totalorder %s2217_s5, %s2210_s24 }
  0xc0   : > { %p2214_p11 = pneg %p2213_p3  ;;  %p2220_p9 = por %p2219_p1, %p2218_p12 }
  0xc2   : > { %p2221_p6 = pnand %p2220_p9, %p2214_p11 }
  0xc4   : > { %2224 = shalt.err (!%p2221_p6)
}
  0xc5   : > { %p3016_p13 = scmp.ne.s32.totalorder %s3009_s6, 0  ;;  %s491_s4 = scalar_lea.vmem [#allocation7], %s2576_s19 }
  0xc6   : > { %s499_s13 = sshll.u32 %s491_s4, 4  ;;  %s2225_s29 = scalar_lea.hbm %s2673_s20, 128  ;;  %s500_s13 = int_to_ptr.vmem [resolvable:$true] %s499_s13 }
  0xc7   : > { %1943 = dma.hbm_to_vmem [thread:$0]  (!%p3016_p13), %s2646_s25, 128, %s2667_s9, %s451_s16  }
  0xc8   : > { %p2226_p0 = scmp.ne.s32.totalorder %s2673_s20, %s2225_s29  ;;  %s2230_s10 = scalar_lea.hbm %s2945_s2, 256 }
  0xc9   : > { %p2231_p2 = scmp.lt.u32.totalorder %s2673_s20, %s2945_s2  ;;  %p2232_p7 = scmp.lt.u32.totalorder %s2230_s10, %s2225_s29 }
  0xca   : > { %p2228_p5 = pnand %p2226_p0, %p3015_p8  ;;  %p2234_p3 = scmp.lt.u32.totalorder %s2225_s29, %s2673_s20 }
  0xcb   : > { %p2233_p4 = por %p2232_p7, %p2231_p2 }
  0xcc   : > { %p2229_p10 = pneg %p2228_p5 }
  0xcd   : > { %p2235_p11 = por %p2234_p3, %p2233_p4 }
  0xcf   : > { %p2236_p12 = pnand %p2235_p11, %p2229_p10 }
  0xd1   : > { %2239 = shalt.err (!%p2236_p12)
}
  0xd2   : > { %s2240_s19 = scalar_lea.vmem %s500_s13, 128  ;;  %s2359_s25 = smov [#allocation7]  }
  0xd3   : > { %p2241_p1 = scmp.ne.s32.totalorder %s500_s13, %s2240_s19  ;;  %s2245_s9 = sshll.u32 %s2359_s25, 4  ;;  %s2246_s9 = int_to_ptr.vmem [resolvable:$false] %s2245_s9 }
  0xd4   : > { %s2247_s16 = scalar_lea.vmem %s2246_s9, 256  ;;  %p2248_p0 = scmp.lt.s32.totalorder %s500_s13, %s2246_s9 }
  0xd5   : > { %p2243_p9 = pnand %p2241_p1, %p3015_p8  ;;  %p2249_p5 = scmp.lt.s32.totalorder %s2247_s16, %s2240_s19 }
  0xd7   : > { %p2244_p6 = pneg %p2243_p9  ;;  %p2250_p13 = por %p2249_p5, %p2248_p0 }
  0xd9   : > { %p2251_p2 = pnand %p2250_p13, %p2244_p6 }
  0xdb   : > { %2254 = shalt.err (!%p2251_p2)
}
  0xdc   : > { %p3017_p7 = scmp.ne.s32.totalorder %s3009_s6, 0  ;;  %p3018_p10 = scmp.ne.s32.totalorder %s2995_s15, 0 }
  0xdd   : > { %s2720_s30 = sand.u32 (!%p3018_p10), 1, %s2333_s26   ;;  %p3019_p8 = scmp.ne.s32.totalorder (!%p3018_p10), %s3003_s21, 0 }
  0xde   : > { %1949 = dma.hbm_to_vmem [thread:$0]  (!%p3017_p7), %s2673_s20, 128, %s500_s13, %s2594_s18  }
  0xdf   : > { %508 = sbr.rel (%p3018_p10) target bundleno = 1940 (0x794), region = 72  ;;  %s2723_s22 = sshll.u32 (!%p3018_p10), %s2720_s30, 3 }
  0xe0   : > { %s511_s8 = scalar_lea.sflag (!%p3018_p10), [#allocation3], %s2720_s30  ;;  %s514_s24 = scalar_lea.vmem (!%p3018_p10), [#allocation2], %s2723_s22 }
  0xe6   : > { %2308 = dma.done.wait (%p3019_p8), %s511_s8, 128  }
  0xe7   : > { %2310 = vsyncadd (%p3019_p8), %s511_s8, 4294967168  ;;  %s519_s6 = sand.u32 1, %s2467_s14   ;;  %s523_s18 = scalar_lea.vmem [#allocation5], %s2723_s22 }
  0xe8   : > { %s520_s15 = scalar_lea.sflag [#allocation6], %s519_s6 }
  0xe9   : > { %2312 = dma.done.wait (%p3019_p8), %s520_s15, 256  }
  0xea   : > { %2314 = vsyncadd (%p3019_p8), %s520_s15, 4294967040  ;;  %s532_s20 = scalar_lea.vmem [#allocation7], %s2723_s22  ;;  %p3020_p13 = scmp.eq.s32.totalorder %s2467_s14, 0 }
  0xec   : > { %2316 = dma.done.wait (%p3020_p13), [#allocation9], 272   ;;  %p3021_p4 = pmov %p3020_p13 }
  0xee   : > { %2318 = vsyncadd (%p3021_p4), [#allocation9], 4294967024  ;;  %p3022_p3 = pmov %p3021_p4 }
  0xf0   : > { %2320 = dma.done.wait (%p3022_p3), [#allocation12], 272   ;;  %p3023_p11 = pmov %p3022_p3 }
  0xf1   : > { %vm607_vm0 = vcmask 261120   ;;  %v603_v0 = vld [vmem:[%s523_s18] sm:$0xff]  ;;  %v2746_v1 = vld [vmem:[%s514_s24] sm:$0xff]  ;;  %s3024_s17 = sld [smem:[#allocation31_spill]]  ;;  %v2360_v16 = vmov 0.0   ;;  %vm2361_vm1 = vmmov 0  }
  0xf2   : > { %2322 = vsyncadd (%p3023_p11), [#allocation12], 4294967024  ;;  %v645_v2 = vsel %vm607_vm0, %v603_v0, 0.0  ;;  %v608_v3 = vsel %vm607_vm0, %v2746_v1, 0.0  ;;  %v2023_v14 = vld [vmem:[#allocation10] sm:$0xff]   ;;  %1815 = vmatprep.subr.bf16.mxu1 %v2360_v16  ;;  %1807 = vmatprep.subr.bf16.mxu0 %v2360_v16  ;;  %v2025_v17 = vld [vmem:[#allocation10 + $0x8] sm:$0xff]  }
  0xf3   : > { %646 = vadd.xlane.f32.xlu0 %v645_v2  ;;  %1816 = vmatpush3.bf16.msra.mxu1 %v2023_v14  ;;  %s3025_s29 = sld [smem:[#allocation29_spill]]  ;;  %s3026_s10 = sld [smem:[#allocation30_spill]]  ;;  %v1749_v49 = vld [vmem:[#allocation11] ss:$0 sm:$0xff]  ;;  %v1745_v54 = vld [vmem:[#allocation8] ss:$0 sm:$0xff] }
  0xf4   : > { %1817 = vmatprep.subr.bf16.mxu1 %v2360_v16  ;;  %1819 = vmatprep.mubr.msk.bf16.mxu1 %vm2361_vm1, %v2360_v16  ;;  %s3027_s19 = sld [smem:[#allocation34_spill]]  ;;  %vm905_vm6 = vcmask 64512   ;;  %s2362_s16 = smov 120   ;;  %vm1152_vm7 = vcmask 1043456  }
  0xf5   : > { %1811 = vmatprep.mubr.msk.bf16.mxu0 %vm2361_vm1, %v2360_v16  ;;  %s2363_s8 = smov 112   ;;  %s2364_s24 = smov 104  }
  0xf6   : > { %s3028_s18 = sld [smem:[#allocation35_spill]]  ;;  %s3030_s3 = sld [smem:[#allocation36_spill]] }
  0xf7   : > { %609 = vadd.xlane.f32.xlu0 %v608_v3  ;;  %v2024_v15 = vld [vmem:[%s3024_s17] sm:$0xff]   ;;  %1818 = vmatpush3.bf16.msra.mxu1 %v2025_v17  ;;  %v2026_v18 = vld [vmem:[%s3024_s17 + $0x8] sm:$0xff]   ;;  %s3031_s5 = sld [smem:[#allocation25_spill]]  ;;  %s600_s13 = scalar_lea.vmem [#allocation14], %s2723_s22 }
  0xf8   : > { %1808 = vmatpush3.bf16.msra.mxu0 %v2024_v15  ;;  %1831 = vmatprep.subr.bf16.mxu1 %v2360_v16  ;;  %s1544_s1 = scalar_lea.sflag [#allocation4], %s2720_s30  ;;  %s2365_s22 = smov [#allocation14]  }
  0xf9   : > { %1809 = vmatprep.subr.bf16.mxu0 %v2360_v16  ;;  %v1743_v35 = vld [vmem:[%s3025_s29] ss:$0 sm:$0xff]  ;;  %s1558_s29 = sshll.u32 %s600_s13, 4  ;;  %s2259_s9 = sshll.u32 %s2365_s22, 4  ;;  %s2895_s29 = int_to_ptr.vmem [resolvable:$true] %s1558_s29  ;;  %s2260_s9 = int_to_ptr.vmem [resolvable:$false] %s2259_s9 }
  0xfa   : > { %v1744_v38 = vld [vmem:[%s3026_s10] ss:$0 sm:$0xff]  ;;  %v2028_v48 = vld [vmem:[%s3027_s19 + $0x8] sm:$0xff]   ;;  %s3032_s10 = sld [smem:[#allocation37_spill]]  ;;  %s2255_s25 = scalar_lea.vmem %s2895_s29, 128 }
  0xfb   : > { %v2027_v46 = vld [vmem:[%s3027_s19] sm:$0xff]   ;;  %p2256_p12 = scmp.ne.s32.totalorder %s2895_s29, %s2255_s25  ;;  %p2262_p0 = scmp.lt.s32.totalorder %s2895_s29, %s2260_s9 }
  0xfc   : > { %1810 = vmatpush3.bf16.msra.mxu0 %v2026_v18 }
  0xfd   : > { %1823 = vmatprep.subr.bf16.mxu0 %v2360_v16  ;;  %p3033_p1 = scmp.ne.s32.totalorder %s3031_s5, 0 }
  0xff   : > { %p2257_p9 = pnand %p2256_p12, %p3033_p1 }
 0x101   : > { %p2258_p6 = pneg %p2257_p9 }
 0x180   : > { %v647_v4 = vpop.xlane.xlu0 %646 }
 0x181   : > { %v648_v5 = vmul.f32 0.03125, %v647_v4 }
 0x183   : > { %v649_v6 = vsub.f32 %v603_v0, %v648_v5  ;;  %v1753_v5 = vld [vmem:[%s3028_s18] ss:$0 sm:$0xff] }
 0x184   : > { %v610_v7 = vpop.xlane.xlu0 %609 }
 0x185   : > { %v612_v8 = vmul.f32 0.03125, %v610_v7  ;;  %v650_v9 = vmul.f32 %v649_v6, %v649_v6  ;;  %v664_v36 = vmul.f32 %v1743_v35, %v649_v6 }
 0x187   : > { %v613_v10 = vsub.f32 %v2746_v1, %v612_v8  ;;  %v651_v11 = vsel %vm607_vm0, %v650_v9, 0.0 }
 0x188   : > { %652 = vadd.xlane.f32.xlu1 %v651_v11 }
 0x189   : > { %v614_v12 = vmul.f32 %v613_v10, %v613_v10  ;;  %v635_v40 = vmul.f32 %v1743_v35, %v613_v10 }
 0x18b   : > { %v615_v13 = vsel %vm607_vm0, %v614_v12, 0.0 }
 0x18c   : > { %616 = vadd.xlane.f32.xlu1 %v615_v13 }
 0x215   : > { %v653_v19 = vpop.xlane.xlu1 %652 }
 0x216   : > { %v654_v20 = vmul.f32 0.032258064, %v653_v19 }
 0x218   : > { %2029 = vrsqrt.f32 %v654_v20  ;;  %vm657_vm2 = vcmp.eq.f32.partialorder %v654_v20, inf  ;;  %v660_v25 = vand.u32 2147483648, %v654_v20  ;;  %vm659_vm3 = vcmp.eq.f32.partialorder %v654_v20, 0.0 }
 0x219   : > { %v617_v21 = vpop.xlane.xlu1 %616 }
 0x21a   : > { %v619_v22 = vmul.f32 0.032258064, %v617_v21 }
 0x21c   : > { %2031 = vrsqrt.f32 %v619_v22  ;;  %vm622_vm4 = vcmp.eq.f32.partialorder %v619_v22, inf  ;;  %v625_v31 = vand.u32 2147483648, %v619_v22  ;;  %vm624_vm5 = vcmp.eq.f32.partialorder %v619_v22, 0.0 }
 0x222   : > { %v2030_v23 = vpop.eup %2029 }
 0x223   : > { %v656_v24 = vmul.f32 %v2030_v23, %v654_v20 }
 0x225   : > { %v658_v26 = vsel %vm657_vm2, %v654_v20, %v656_v24 }
 0x226   : > { %v2032_v27 = vpop.eup %2031  ;;  %v661_v28 = vsel %vm659_vm3, %v660_v25, %v658_v26  ;;  %v604_v25 = vld [vmem:[%s532_s20] sm:$0xff]  ;;  %s3029_s20 = sld [smem:[#allocation21_spill]] }
 0x227   : > { %v662_v29 = vadd.f32 1e-06, %v661_v28  ;;  %v621_v30 = vmul.f32 %v2032_v27, %v619_v22  ;;  %vm1094_vm8 = vcmp.eq.f32.partialorder %v604_v25, 0.0 }
 0x229   : > { %v623_v32 = vsel %vm622_vm4, %v619_v22, %v621_v30  ;;  %2033 = vrcp.f32 %v662_v29 }
 0x22a   : > { %v626_v33 = vsel %vm624_vm5, %v625_v31, %v623_v32 }
 0x22b   : > { %v627_v34 = vadd.f32 1e-06, %v626_v33 }
 0x22c   : > { %s1771_s4 = sshll.u32 %s3029_s20, 7 }
 0x22d   : > { %2035 = vrcp.f32 %v627_v34  ;;  %s2893_s28 = scalar_lea.hbm %s3032_s10, %s1771_s4 }
 0x233   : > { %v2034_v37 = vpop.eup %2033 }
 0x234   : > { %v665_v39 = vmul.f32 %v2034_v37, %v664_v36 }
 0x236   : > { %v666_v41 = vadd.f32 %v1744_v38, %v665_v39 }
 0x237   : > { %v2036_v42 = vpop.eup %2035 }
 0x238   : > { %v667_v43 = vpack.c.bf16 %v666_v41, %v666_v41  ;;  %v636_v44 = vmul.f32 %v2036_v42, %v635_v40 }
 0x23a   : > { %1820 = vmatmul.mubr.msk.bf16.vlgmr.msra.gmra.mrb[0].mxu1 %vm607_vm0, %v667_v43  ;;  %v643_v45 = vadd.f32 %v1744_v38, %v636_v44 }
 0x23b   : > { %1833 = vmatprep.mubr.msk.bf16.mxu1 %vm2361_vm1, %v2360_v16 }
 0x23c   : > { %v644_v47 = vpack.c.bf16 %v643_v45, %v643_v45 }
 0x23e   : > { %1812 = vmatmul.mubr.msk.bf16.vlgmr.msra.gmra.mrb[0].mxu0 %vm607_vm0, %v644_v47 }
 0x23f   : > { %1824 = vmatpush3.bf16.msra.mxu0 %v2027_v46  ;;  %1827 = vmatprep.mubr.msk.bf16.mxu0 %vm2361_vm1, %v2360_v16 }
 0x240   : > { %1825 = vmatprep.subr.bf16.mxu0 %v2360_v16 }
 0x243   : > { %1826 = vmatpush3.bf16.msra.mxu0 %v2028_v48 }
 0x244   : > { %1837 = vmatprep.subr.bf16.mxu0 %v2360_v16 }
 0x246   : > { %1828 = vmatmul.mubr.msk.bf16.vlgmr.msra.gmra.mrb[4].mxu0 %vm607_vm0, %v667_v43 }
 0x247   : > { %1839 = vmatprep.mubr.msk.bf16.mxu0 %vm2361_vm1, %v2360_v16 }
 0x30d   : > { %v794_v50 = vpop.f32.mrb[0].mxu1 }
 0x30e   : > { %v795_v51 = vadd.f32 %v1749_v49, %v794_v50  ;;  %v1821_v52 = vpop.f32.mrb[1].mxu1 }
 0x30f   : > { %v797_v53 = vpop.f32.mrb[2].mxu1 }
 0x310   : > { %v1822_v55 = vpop.f32.mrb[3].mxu1  ;;  %878 = vrot.lane.b32.xlu0 %v795_v51, %s2362_s16  ;;  %881 = vrot.lane.b32.xlu1 %v795_v51, %s2363_s8  ;;  %v887_v56 = vpack.c.bf16 %v795_v51, %v795_v51 }
 0x311   : > { %v728_v57 = vpop.f32.mrb[0].mxu0 }
 0x312   : > { %v729_v58 = vadd.f32 %v1745_v54, %v728_v57  ;;  %v1813_v59 = vpop.f32.mrb[1].mxu0  ;;  %v910_v60 = vsel %vm905_vm6, %v887_v56, 0 }
 0x313   : > { %v731_v61 = vpop.f32.mrb[2].mxu0  ;;  %1832 = vmatpush3.bf16.xpose.msra.mxu1 %v910_v60 }
 0x314   : > { %867 = vrot.lane.b32.xlu0 %v729_v58, %s2363_s8  ;;  %864 = vrot.lane.b32.xlu1 %v729_v58, %s2362_s16  ;;  %v1814_v62 = vpop.f32.mrb[3].mxu0  ;;  %v873_v63 = vpack.c.bf16 %v729_v58, %v729_v58 }
 0x315   : > { %1843 = vmatprep.subr.bf16.mxu1 %v2360_v16 }
 0x318   : > { %884 = vrot.lane.b32.xlu1 %v795_v51, %s2364_s24 }
 0x319   : > { %v857_v0 = vpop.f32.mrb[4].mxu0 }
 0x31a   : > { %v1829_v2 = vpop.f32.mrb[5].mxu0  ;;  %1834 = vmatmul.mubr.msk.bf16.vlgmr.msra.gmra.mrb[4].mxu1 %vm905_vm6, %v873_v63  ;;  %v2807_v10 = vadd.f32 %v1753_v5, %v857_v0 }
 0x31b   : > { %v860_v3 = vpop.f32.mrb[6].mxu0  ;;  %1845 = vmatprep.mubr.msk.bf16.mxu1 %vm2361_vm1, %v2360_v16 }
 0x31c   : > { %870 = vrot.lane.b32.xlu1 %v729_v58, %s2364_s24  ;;  %v1830_v4 = vpop.f32.mrb[7].mxu0  ;;  %v901_v15 = vpack.c.bf16 %v2807_v10, %v2807_v10 }
 0x31e   : > { %v1154_v22 = vsel %vm1152_vm7, %v901_v15, 0 }
 0x382   : > { %v882_v6 = vpop.permute.xlu1 %881  ;;  %v879_v7 = vpop.permute.xlu0 %878 }
 0x383   : > { %v889_v8 = vpack.c.bf16 %v882_v6, %v882_v6  ;;  %v888_v9 = vpack.c.bf16 %v879_v7, %v879_v7 }
 0x385   : > { %v1002_v11 = vsel %vm905_vm6, %v889_v8, 0  ;;  %v956_v12 = vsel %vm905_vm6, %v888_v9, 0 }
 0x386   : > { %1844 = vmatpush3.bf16.xpose.msra.mxu1 %v1002_v11  ;;  %v865_v13 = vpop.permute.xlu1 %864  ;;  %1838 = vmatpush3.bf16.xpose.msra.mxu0 %v956_v12  ;;  %v868_v14 = vpop.permute.xlu0 %867 }
 0x387   : > { %1849 = vmatprep.subr.bf16.mxu0 %v2360_v16  ;;  %1855 = vmatprep.subr.bf16.mxu1 %v2360_v16  ;;  %v874_v18 = vpack.c.bf16 %v865_v13, %v865_v13  ;;  %v875_v19 = vpack.c.bf16 %v868_v14, %v868_v14 }
 0x38a   : > { %v885_v17 = vpop.permute.xlu1 %884 }
 0x38b   : > { %v890_v20 = vpack.c.bf16 %v885_v17, %v885_v17 }
 0x38d   : > { %v1048_v21 = vsel %vm905_vm6, %v890_v20, 0  ;;  %1840 = vmatmul.mubr.msk.bf16.vlgmr.msra.gmra.mrb[8].mxu0 %vm905_vm6, %v874_v18  ;;  %1846 = vmatmul.mubr.msk.bf16.vlgmr.msra.gmra.mrb[8].mxu1 %vm905_vm6, %v875_v19 }
 0x38e   : > { %1850 = vmatpush3.bf16.xpose.msra.mxu0 %v1048_v21  ;;  %1856 = vmatpush3.bf16.msra.mxu1 %v1154_v22  ;;  %v871_v23 = vpop.permute.xlu1 %870 }
 0x38f   : > { %1851 = vmatprep.mubr.msk.bf16.mxu0 %vm2361_vm1, %v2360_v16  ;;  %1857 = vmatprep.mubr.msk.bf16.mxu1 %vm2361_vm1, %v2360_v16  ;;  %v876_v24 = vpack.c.bf16 %v871_v23, %v871_v23 }
 0x390   : > { %1861 = vmatprep.subr.bf16.mxu0 %v2360_v16  ;;  %1867 = vmatprep.subr.bf16.mxu1 %v2360_v16 }
 0x395   : > { %1852 = vmatmul.mubr.msk.bf16.vlgmr.msra.gmra.mrb[12].mxu0 %vm905_vm6, %v876_v24 }
 0x396   : > { %1863 = vmatprep.mubr.msk.bf16.mxu0 %vm2361_vm1, %v2360_v16 }
 0x3ed   : > { %v946_v26 = vpop.f32.mrb[4].mxu1 }
 0x3ee   : > { %v1090_v27 = vmul.f32 0.35355338, %v946_v26  ;;  %v1835_v28 = vpop.f32.mrb[5].mxu1 }
 0x3ef   : > { %v949_v29 = vpop.f32.mrb[6].mxu1 }
 0x3f0   : > { %v1836_v30 = vpop.f32.mrb[7].mxu1  ;;  %v1097_v31 = vsel %vm1094_vm8, -1e+09, %v1090_v27  ;;  %v1338_v27 = vld [vmem:[#allocation13] sm:$0xf] }
 0x3f1   : > { %v1101_v32 = vsel %vm905_vm6, %v1097_v31, -inf }
 0x3f2   : > { %1102 = vmax.xlane.f32.xlu0 %v1101_v32 }
 0x460   : > { %v992_v33 = vpop.f32.mrb[8].mxu0  ;;  %v1038_v34 = vpop.f32.mrb[8].mxu1 }
 0x461   : > { %v1091_v35 = vmul.f32 0.35355338, %v992_v33  ;;  %v1092_v36 = vmul.f32 0.35355338, %v1038_v34  ;;  %v1841_v37 = vpop.f32.mrb[9].mxu0  ;;  %v1847_v38 = vpop.f32.mrb[9].mxu1 }
 0x462   : > { %v995_v39 = vpop.f32.mrb[10].mxu0  ;;  %v1041_v40 = vpop.f32.mrb[10].mxu1 }
 0x463   : > { %v1842_v41 = vpop.f32.mrb[11].mxu0  ;;  %v1848_v42 = vpop.f32.mrb[11].mxu1  ;;  %v1098_v43 = vsel %vm1094_vm8, -1e+09, %v1091_v35  ;;  %v1099_v44 = vsel %vm1094_vm8, -1e+09, %v1092_v36 }
 0x464   : > { %v1104_v45 = vsel %vm905_vm6, %v1098_v43, -inf  ;;  %v1107_v46 = vsel %vm905_vm6, %v1099_v44, -inf  ;;  %v1339_v39 = vld [vmem:[#allocation13 + $0x4] sm:$0xf]  ;;  %v1340_v41 = vld [vmem:[#allocation13 + $0x8] sm:$0xf] }
 0x465   : > { %1105 = vmax.xlane.f32.xlu1 %v1104_v45  ;;  %1108 = vmax.xlane.f32.xlu0 %v1107_v46  ;;  %v1392_v40 = vsel %vm1152_vm7, %v1339_v39, 0  ;;  %v1438_v45 = vsel %vm1152_vm7, %v1340_v41, 0 }
 0x468   : > { %v1084_v47 = vpop.f32.mrb[12].mxu0 }
 0x469   : > { %v1093_v48 = vmul.f32 0.35355338, %v1084_v47  ;;  %v1853_v49 = vpop.f32.mrb[13].mxu0 }
 0x46a   : > { %v1087_v50 = vpop.f32.mrb[14].mxu0 }
 0x46b   : > { %v1854_v51 = vpop.f32.mrb[15].mxu0  ;;  %v1100_v52 = vsel %vm1094_vm8, -1e+09, %v1093_v48  ;;  %v1341_v48 = vld [vmem:[#allocation13 + $0xc] sm:$0xf] }
 0x46c   : > { %v1110_v53 = vsel %vm905_vm6, %v1100_v52, -inf }
 0x46d   : > { %1111 = vmax.xlane.f32.xlu0 %v1110_v53  ;;  %v1484_v53 = vsel %vm1152_vm7, %v1341_v48, 0 }
 0x47f   : > { %v1103_v54 = vpop.xlane.xlu0 %1102 }
 0x480   : > { %v1113_v55 = vsub.f32 %v1097_v31, %v1103_v54  ;;  %v1346_v31 = vsel %vm1152_vm7, %v1338_v27, 0 }
 0x482   : > { %v1117_v56 = vmul.f32 1.442695, %v1113_v55 }
 0x484   : > { %2037 = vpow2.f32 %v1117_v56 }
 0x48e   : > { %v2038_v57 = vpop.eup %2037 }
 0x48f   : > { %v1125_v58 = vsel %vm905_vm6, %v2038_v57, 0.0 }
 0x490   : > { %1126 = vadd.xlane.f32.xlu0 %v1125_v58 }
 0x4f2   : > { %v1106_v59 = vpop.xlane.xlu1 %1105  ;;  %v1109_v60 = vpop.xlane.xlu0 %1108 }
 0x4f3   : > { %v1114_v61 = vsub.f32 %v1098_v43, %v1106_v59  ;;  %v1115_v62 = vsub.f32 %v1099_v44, %v1109_v60 }
 0x4f5   : > { %v1119_v63 = vmul.f32 1.442695, %v1114_v61  ;;  %v1121_v0 = vmul.f32 1.442695, %v1115_v62 }
 0x4f7   : > { %2039 = vpow2.f32 %v1119_v63 }
 0x4f8   : > { %2041 = vpow2.f32 %v1121_v0 }
 0x4fa   : > { %v1112_v6 = vpop.xlane.xlu0 %1111 }
 0x4fb   : > { %v1116_v8 = vsub.f32 %v1100_v52, %v1112_v6 }
 0x4fd   : > { %v1123_v9 = vmul.f32 1.442695, %v1116_v8 }
 0x501   : > { %v2040_v2 = vpop.eup %2039 }
 0x502   : > { %v2042_v3 = vpop.eup %2041  ;;  %v1128_v4 = vsel %vm905_vm6, %v2040_v2, 0.0 }
 0x503   : > { %1129 = vadd.xlane.f32.xlu1 %v1128_v4  ;;  %v1131_v5 = vsel %vm905_vm6, %v2042_v3, 0.0 }
 0x504   : > { %1132 = vadd.xlane.f32.xlu0 %v1131_v5 }
 0x514   : > { %895 = vrot.lane.b32.xlu1 %v2807_v10, %s2363_s8 }
 0x51a   : > { %892 = vrot.lane.b32.xlu0 %v2807_v10, %s2362_s16  ;;  %s2261_s16 = scalar_lea.vmem %s2260_s9, 256 }
 0x51b   : > { %p2263_p5 = scmp.lt.s32.totalorder %s2261_s16, %s2255_s25 }
 0x51d   : > { %v1127_v7 = vpop.xlane.xlu0 %1126  ;;  %p2264_p2 = por %p2263_p5, %p2262_p0 }
 0x51e   : > { %2043 = vrcp.f32 %v1127_v7 }
 0x51f   : > { %2045 = vpow2.f32 %v1123_v9  ;;  %p2265_p7 = pnand %p2264_p2, %p2258_p6 }
 0x528   : > { %v2044_v11 = vpop.eup %2043 }
 0x529   : > { %v1141_v12 = vmul.f32 %v2044_v11, %v2038_v57  ;;  %v2046_v14 = vpop.eup %2045 }
 0x52a   : > { %v1134_v15 = vsel %vm905_vm6, %v2046_v14, 0.0 }
 0x52b   : > { %v1145_v13 = vpack.c.bf16 %v1141_v12, %v1141_v12 }
 0x52d   : > { %1858 = vmatmul.mubr.msk.bf16.vlgmr.msra.gmra.mrb[12].mxu1 %vm905_vm6, %v1145_v13 }
 0x52e   : > { %1869 = vmatprep.mubr.msk.bf16.mxu1 %vm2361_vm1, %v2360_v16 }
 0x538   : > { %1135 = vadd.xlane.f32.xlu1 %v1134_v15 }
 0x549   : > { %898 = vrot.lane.b32.xlu1 %v2807_v10, %s2364_s24 }
 0x590   : > { %v1130_v17 = vpop.xlane.xlu1 %1129 }
 0x591   : > { %2047 = vrcp.f32 %v1130_v17  ;;  %v1133_v18 = vpop.xlane.xlu0 %1132 }
 0x592   : > { %2049 = vrcp.f32 %v1133_v18 }
 0x594   : > { %v896_v19 = vpop.permute.xlu1 %895 }
 0x595   : > { %v903_v20 = vpack.c.bf16 %v896_v19, %v896_v19  ;;  %v893_v21 = vpop.permute.xlu0 %892 }
 0x596   : > { %v902_v22 = vpack.c.bf16 %v893_v21, %v893_v21 }
 0x597   : > { %v1246_v23 = vsel %vm1152_vm7, %v903_v20, 0 }
 0x598   : > { %v1200_v24 = vsel %vm1152_vm7, %v902_v22, 0  ;;  %1868 = vmatpush3.bf16.msra.mxu1 %v1246_v23  ;;  %v1769_v22 = vld [vmem:[%s3030_s3] ss:$0 sm:$0xff] }
 0x599   : > { %1862 = vmatpush3.bf16.msra.mxu0 %v1200_v24  ;;  %1879 = vmatprep.subr.bf16.mxu1 %v2360_v16 }
 0x59a   : > { %1873 = vmatprep.subr.bf16.mxu0 %v2360_v16 }
 0x59b   : > { %v2048_v25 = vpop.eup %2047 }
 0x59c   : > { %v2050_v10 = vpop.eup %2049  ;;  %v1142_v26 = vmul.f32 %v2048_v25, %v2040_v2 }
 0x59d   : > { %v1143_v28 = vmul.f32 %v2050_v10, %v2042_v3 }
 0x59e   : > { %v1146_v29 = vpack.c.bf16 %v1142_v26, %v1142_v26 }
 0x59f   : > { %v1147_v30 = vpack.c.bf16 %v1143_v28, %v1143_v28 }
 0x5a0   : > { %1864 = vmatmul.mubr.msk.bf16.vlgmr.msra.gmra.mrb[16].mxu0 %vm905_vm6, %v1146_v29 }
 0x5a1   : > { %1870 = vmatmul.mubr.msk.bf16.vlgmr.msra.gmra.mrb[16].mxu1 %vm905_vm6, %v1147_v30  ;;  %1875 = vmatprep.mubr.msk.bf16.mxu0 %vm2361_vm1, %v2360_v16 }
 0x5a2   : > { %1880 = vmatpush3.bf16.msra.mxu1 %v1346_v31  ;;  %1881 = vmatprep.mubr.msk.bf16.mxu1 %vm2361_vm1, %v2360_v16 }
 0x5a3   : > { %1891 = vmatprep.subr.bf16.mxu1 %v2360_v16 }
 0x5c5   : > { %v1136_v32 = vpop.xlane.xlu1 %1135 }
 0x5c6   : > { %2051 = vrcp.f32 %v1136_v32 }
 0x5c9   : > { %v899_v33 = vpop.permute.xlu1 %898 }
 0x5ca   : > { %v904_v34 = vpack.c.bf16 %v899_v33, %v899_v33 }
 0x5cc   : > { %v1292_v35 = vsel %vm1152_vm7, %v904_v34, 0 }
 0x5cd   : > { %1874 = vmatpush3.bf16.msra.mxu0 %v1292_v35 }
 0x5ce   : > { %1885 = vmatprep.subr.bf16.mxu0 %v2360_v16 }
 0x5d0   : > { %v2052_v36 = vpop.eup %2051 }
 0x5d1   : > { %v1144_v37 = vmul.f32 %v2052_v36, %v2046_v14 }
 0x5d3   : > { %v1148_v38 = vpack.c.bf16 %v1144_v37, %v1144_v37 }
 0x5d5   : > { %1876 = vmatmul.mubr.msk.bf16.vlgmr.msra.gmra.mrb[20].mxu0 %vm905_vm6, %v1148_v38 }
 0x5d6   : > { %1887 = vmatprep.mubr.msk.bf16.mxu0 %vm2361_vm1, %v2360_v16  ;;  %1886 = vmatpush3.bf16.msra.mxu0 %v1392_v40 }
 0x5d7   : > { %1897 = vmatprep.subr.bf16.mxu0 %v2360_v16 }
 0x600   : > { %v1190_v42 = vpop.f32.mrb[12].mxu1 }
 0x601   : > { %v1334_v43 = vpack.c.bf16 %v1190_v42, %v1190_v42  ;;  %v1859_v44 = vpop.f32.mrb[13].mxu1 }
 0x602   : > { %v1193_v46 = vpop.f32.mrb[14].mxu1 }
 0x603   : > { %v1860_v47 = vpop.f32.mrb[15].mxu1  ;;  %1882 = vmatmul.mubr.msk.bf16.vlgmr.msra.gmra.mrb[20].mxu1 %vm905_vm6, %v1334_v43 }
 0x604   : > { %1892 = vmatpush3.bf16.msra.mxu1 %v1438_v45  ;;  %1893 = vmatprep.mubr.msk.bf16.mxu1 %vm2361_vm1, %v2360_v16 }
 0x673   : > { %v1236_v49 = vpop.f32.mrb[16].mxu0 }
 0x674   : > { %v1335_v50 = vpack.c.bf16 %v1236_v49, %v1236_v49  ;;  %v1282_v51 = vpop.f32.mrb[16].mxu1  ;;  %v1865_v52 = vpop.f32.mrb[17].mxu0 }
 0x675   : > { %v1336_v54 = vpack.c.bf16 %v1282_v51, %v1282_v51  ;;  %v1871_v55 = vpop.f32.mrb[17].mxu1  ;;  %v1239_v56 = vpop.f32.mrb[18].mxu0 }
 0x676   : > { %v1285_v57 = vpop.f32.mrb[18].mxu1  ;;  %v1866_v58 = vpop.f32.mrb[19].mxu0  ;;  %1888 = vmatmul.mubr.msk.bf16.vlgmr.msra.gmra.mrb[24].mxu0 %vm905_vm6, %v1335_v50 }
 0x677   : > { %v1872_v59 = vpop.f32.mrb[19].mxu1  ;;  %1894 = vmatmul.mubr.msk.bf16.vlgmr.msra.gmra.mrb[24].mxu1 %vm905_vm6, %v1336_v54  ;;  %1898 = vmatpush3.bf16.msra.mxu0 %v1484_v53 }
 0x678   : > { %1899 = vmatprep.mubr.msk.bf16.mxu0 %vm2361_vm1, %v2360_v16 }
 0x6a8   : > { %v1328_v60 = vpop.f32.mrb[20].mxu0 }
 0x6a9   : > { %v1337_v61 = vpack.c.bf16 %v1328_v60, %v1328_v60  ;;  %v1877_v62 = vpop.f32.mrb[21].mxu0 }
 0x6aa   : > { %v1331_v63 = vpop.f32.mrb[22].mxu0 }
 0x6ab   : > { %v1878_v0 = vpop.f32.mrb[23].mxu0  ;;  %1900 = vmatmul.mubr.msk.bf16.vlgmr.msra.gmra.mrb[28].mxu0 %vm905_vm6, %v1337_v61 }
 0x6d6   : > { %v1382_v2 = vpop.f32.mrb[20].mxu1 }
 0x6d7   : > { %v1883_v3 = vpop.f32.mrb[21].mxu1  ;;  %v1526_v7 = vsel %vm607_vm0, %v1382_v2, 0.0 }
 0x6d8   : > { %v1385_v4 = vpop.f32.mrb[22].mxu1 }
 0x6d9   : > { %v1884_v5 = vpop.f32.mrb[23].mxu1 }
 0x749   : > { %v1428_v6 = vpop.f32.mrb[24].mxu0 }
 0x74a   : > { %v1527_v8 = vsel %vm607_vm0, %v1428_v6, 0.0  ;;  %v1474_v9 = vpop.f32.mrb[24].mxu1  ;;  %v1889_v11 = vpop.f32.mrb[25].mxu0 }
 0x74b   : > { %v1528_v16 = vadd.f32 %v1527_v8, %v1526_v7  ;;  %v1895_v12 = vpop.f32.mrb[25].mxu1  ;;  %v1431_v13 = vpop.f32.mrb[26].mxu0  ;;  %v1529_v14 = vsel %vm607_vm0, %v1474_v9, 0.0 }
 0x74c   : > { %v1477_v15 = vpop.f32.mrb[26].mxu1  ;;  %v1890_v17 = vpop.f32.mrb[27].mxu0 }
 0x74d   : > { %v1530_v18 = vadd.f32 %v1529_v14, %v1528_v16  ;;  %v1896_v19 = vpop.f32.mrb[27].mxu1 }
 0x77e   : > { %v1520_v20 = vpop.f32.mrb[28].mxu0 }
 0x77f   : > { %v1531_v21 = vsel %vm607_vm0, %v1520_v20, 0.0  ;;  %v1901_v23 = vpop.f32.mrb[29].mxu0 }
 0x780   : > { %v1532_v24 = vadd.f32 %v1531_v21, %v1530_v18  ;;  %v1523_v25 = vpop.f32.mrb[30].mxu0 }
 0x781   : > { %v1902_v10 = vpop.f32.mrb[31].mxu0 }
 0x782   : > { %v1540_v26 = vadd.f32 %v1769_v22, %v1532_v24 }
 0x784   : > { %v1541_v27 = vadd.f32 %v1540_v26, %v2746_v1 }
 0x786   : > { %1542 = vst.msk [vmem:[%s600_s13] sm:$0xff] %vm607_vm0, %v1541_v27 }
 0x787   : > { %2268 = shalt.err (!%p2265_p7)
}
 0x788   : > { %s2269_s30 = scalar_lea.hbm %s2893_s28, 128  ;;  %s2273_s6 = scalar_lea.hbm %s3032_s10, 256 }
 0x789   : > { %p2270_p10 = scmp.ne.s32.totalorder %s2893_s28, %s2269_s30  ;;  %p2274_p4 = scmp.lt.u32.totalorder %s2893_s28, %s3032_s10 }
 0x78a   : > { %p2275_p3 = scmp.lt.u32.totalorder %s2273_s6, %s2269_s30  ;;  %p2277_p12 = scmp.lt.u32.totalorder %s2269_s30, %s2893_s28 }
 0x78b   : > { %p2271_p8 = pnand %p2270_p10, %p3033_p1 }
 0x78c   : > { %p2276_p11 = por %p2275_p3, %p2274_p4 }
 0x78d   : > { %p2272_p13 = pneg %p2271_p8 }
 0x78e   : > { %p2278_p9 = por %p2277_p12, %p2276_p11 }
 0x790   : > { %p2279_p6 = pnand %p2278_p9, %p2272_p13 }
 0x792   : > { %2282 = shalt.err (!%p2279_p6)
}
 0x793   : > { %1925 = dma.vmem_to_hbm [thread:$0]  (%p3033_p1), %s2895_s29, 128, %s2893_s28, %s1544_s1  }
 0x794 PF: > { %s3034_s20 = sld [smem:[#allocation20_spill]]  ;;  %s3035_s14 = sld [smem:[#allocation27_spill]] }
 0x795   : > { %s3036_s21 = sld [smem:[#allocation23_spill]] }
 0x79a   : > { %s1570_s3 = sand.u32 1, %s3034_s20   ;;  %p3037_p0 = scmp.ne.s32.totalorder %s3035_s14, 0 }
 0x79b   : > { %p3038_p5 = scmp.ge.s32.totalorder %s3036_s21, 2  ;;  %s1571_s4 = scalar_lea.sflag [#allocation4], %s1570_s3 }
 0x79d   : > { %p1951_p2 = pnand %p3038_p5, %p3037_p0 }
 0x79f   : > { %2324 = dma.done.wait (!%p1951_p2), %s1571_s4, 128  }
 0x7a0   : > { %2326 = vsyncadd (!%p1951_p2), %s1571_s4, 4294967168  ;;  %s34_s30 = sadd.s32 1, %s3036_s21   ;;  %s3039_s5 = sld [smem:[#allocation26_spill]] }
 0x7a1   : > { %p31_p7 = scmp.ge.s32.totalorder %s34_s30, 4   ;;  %s3040_s28 = sld [smem:[#allocation22_spill]] }
 0x7a2   : > { %s3041_s29 = sld [smem:[#allocation24_spill]]  ;;  %s3042_s25 = smov %s2333_s26 }
 0x7a3   : > { %s3043_s26 = smov %s2337_s27  ;;  %33 = sbr.rel (!%p31_p7) target bundleno = 21 (0x15), region = 157 }
 0x7a6   : > { %s3044_s27 = smov %s3039_s5 }
 0x7aa   :  { %1576 = vsyncpa [#allocation3], 1 }
 0x7ab   :  { %1578 = vsyncpa [#allocation3 + $0x1], 1 }
 0x7ac   :  { %1579 = vsyncpa [#allocation6], 1 }
 0x7ad   :  { %1581 = vsyncpa [#allocation6 + $0x1], 1 }
 0x7ae   :  { %1582 = vsyncpa [#allocation9], 1 }
 0x7af   :  { %1583 = vsyncpa [#allocation12], 1 }
 0x7b0   :  { %1584 = vsyncpa [#allocation4], 1 }
 0x7b1   :  { %1586 = vsyncpa [#allocation4 + $0x1], 1 }

</bundles_post_ra>
